<compile_context>
chip_gen: v5e
topology: v5e:2x2
jax: 0.10.0
libtpu: 0.0.40
codegen_flags: <defaults>
</compile_context>

<pallas_src>
import jax
import jax.numpy as jnp
from jax.experimental import pallas as pl
from jax.experimental.pallas import tpu as pltpu

VOCAB = 50
VOCAB_PAD = 64                 # pad vocab so the one-hot matmul K-dim is aligned
EMBED = 32
MAX_NORM = 1.0
HIDDEN = 32
NUM_LAYERS = 2
OUTPUT_DIM = 4
BATCH = 2
SEQ = 8
NBRANCH = 3                    # text / keywords / locations (share embedding + GRU weights)
NB = NBRANCH * BATCH           # merged batch
NB_PAD = 8                     # pad merged batch to one sublane group


def _vmem():
    return pl.BlockSpec(memory_space=pltpu.MemorySpace.VMEM)


# ----------------------------- fused forward kernel --------------------------------
def fused_forward_kernel(ids_ref, wslab_ref, mlpw_ref, bias_ref, o_ref):
    f32, bf16 = jnp.float32, jnp.bfloat16
    H = HIDDEN
    H2, H3 = 2 * HIDDEN, 3 * HIDDEN
    SN = SEQ * NB_PAD
    B = BATCH

    # ---- static, sublane-aligned views into the packed weight slabs ----
    embw = wslab_ref[0:VOCAB_PAD, :]                                 # (64, 96)  emb@Wih0 + gb0
    whh0 = wslab_ref[VOCAB_PAD:VOCAB_PAD + H, :]                     # (32, 96)
    wih1 = wslab_ref[VOCAB_PAD + H:VOCAB_PAD + 2 * H, :]             # (32, 96)
    whh1 = wslab_ref[VOCAB_PAD + 2 * H:VOCAB_PAD + 3 * H, :]         # (32, 96)
    w1 = mlpw_ref[0:H3, :]                                           # (96, 32)
    w2 = mlpw_ref[H3:H3 + H, :]                                      # (32, 32) BN-folded, zero-padded cols

    # ---- bias tile rows (hoisted broadcasts: JAX doesn't CSE broadcast_in_dim) ----
    gb1 = jnp.broadcast_to(bias_ref[0:1, 0:H3], (NB_PAD, H3))
    bhn0 = jnp.broadcast_to(bias_ref[1:2, 0:H], (NB_PAD, H))
    bhn1 = jnp.broadcast_to(bias_ref[2:3, 0:H], (NB_PAD, H))
    b1 = bias_ref[3:4, 0:H]
    b2 = bias_ref[4:5, 0:OUTPUT_DIM]

    # ---- embedding lookup + layer-0 input projection as ONE exact one-hot matmul,
    #      hoisted off the serial recurrence (bias folded into the table rows). ----
    ids = ids_ref[...]                                               # (SN, 1) int32, time-major
    lane = jax.lax.broadcasted_iota(jnp.int32, (SN, VOCAB_PAD), 1)
    onehot = jnp.where(lane == ids, 1.0, 0.0).astype(bf16)
    gi0 = jnp.dot(onehot, embw, preferred_element_type=f32)          # (SN, 3H)
    # drop_1 / inter-layer GRU dropout / drop_2 / decoder Dropout are identity at inference.

    def gru_step(gi_t, h, whh, bhn_b):
        # One MXU push per step; merged r/z sigmoid (one EUP push); 3-op state update.
        gh = jnp.dot(h.astype(bf16), whh, preferred_element_type=f32)     # (8, 3H)
        rz = jax.nn.sigmoid(gi_t[:, 0:H2] + gh[:, 0:H2])
        r, z = rz[:, 0:H], rz[:, H:H2]
        n = jnp.tanh(gi_t[:, H2:H3] + r * (gh[:, H2:H3] + bhn_b))
        return n + z * (h - n)                                            # == (1-z)*n + z*h

    # ---- two-layer GRU, software-pipelined over time: layer-1 step t only needs h0_t and
    #      h1_{t-1}, so the two recurrence chains overlap in the unrolled block. ----
    h0 = jnp.zeros((NB_PAD, H), f32)
    h1 = jnp.zeros((NB_PAD, H), f32)
    for t in range(SEQ):                                             # static unroll, S=8
        h0 = gru_step(gi0[t * NB_PAD:(t + 1) * NB_PAD, :], h0, whh0, bhn0)
        gi1_t = jnp.dot(h0.astype(bf16), wih1, preferred_element_type=f32) + gb1
        h1 = gru_step(gi1_t, h1, whh1, bhn1)

    # ---- torch.concat([text, keywords, locations], -1): rows 0:B / B:2B / 2B:3B. ----
    feats = jnp.concatenate([h1[0:B], h1[B:2 * B], h1[2 * B:3 * B]], axis=-1)   # (B, 3H)

    # ---- Decoder MLP: Linear -> ReLU -> (BatchNorm folded into w2/b2) -> Linear. ----
    m = jnp.maximum(jnp.dot(feats.astype(bf16), w1, preferred_element_type=f32) + b1, 0.0)
    logits = jnp.dot(m.astype(bf16), w2, preferred_element_type=f32)            # (B, H)
    o_ref[...] = logits[:, 0:OUTPUT_DIM] + b2


# ----------------------------- params ----------------------------------------------
def init_params(key):
    p = {}
    emb = 0.1 * jax.random.normal(jax.random.fold_in(key, 0), (VOCAB, EMBED), jnp.float32)
    # nn.Embedding(max_norm=...): renormalize rows whose L2 norm exceeds max_norm.
    # TODO(synk): PyTorch applies this renorm lazily (in-place, only on rows looked up);
    # pre-renorming the whole table is equivalent for inference outputs.
    norms = jnp.linalg.norm(emb, axis=-1, keepdims=True)
    p["embedding"] = jnp.where(norms > MAX_NORM, emb * (MAX_NORM / (norms + 1e-7)), emb)

    k = 1.0 / jnp.sqrt(jnp.float32(HIDDEN))
    for l in range(NUM_LAYERS):
        in_dim = EMBED if l == 0 else HIDDEN
        p[f"wih_{l}"] = k * jax.random.normal(jax.random.fold_in(key, 10 + l), (3, in_dim, HIDDEN), jnp.float32)
        p[f"whh_{l}"] = k * jax.random.normal(jax.random.fold_in(key, 20 + l), (3, HIDDEN, HIDDEN), jnp.float32)
        p[f"bih_{l}"] = k * jax.random.normal(jax.random.fold_in(key, 30 + l), (3, 1, HIDDEN), jnp.float32)
        p[f"bhh_{l}"] = k * jax.random.normal(jax.random.fold_in(key, 40 + l), (3, 1, HIDDEN), jnp.float32)

    p["w1"] = 0.1 * jax.random.normal(jax.random.fold_in(key, 50), (3 * HIDDEN, HIDDEN), jnp.float32)
    p["b1"] = jnp.zeros((1, HIDDEN), jnp.float32)
    p["gamma"] = jnp.ones((1, HIDDEN), jnp.float32)   # BatchNorm1d weight
    p["beta"] = jnp.zeros((1, HIDDEN), jnp.float32)   # BatchNorm1d bias
    p["rm"] = jnp.zeros((1, HIDDEN), jnp.float32)     # running_mean
    p["rv"] = jnp.ones((1, HIDDEN), jnp.float32)      # running_var
    p["w2"] = 0.1 * jax.random.normal(jax.random.fold_in(key, 51), (HIDDEN, OUTPUT_DIM), jnp.float32)
    p["b2"] = jnp.zeros((1, OUTPUT_DIM), jnp.float32)
    return p


def prepare_kernel_params(p):
    """Fold / pack params into the fused-kernel layout (gate order r, z, n along the 3H axis).

    Produces exactly 3 packed operands:
      wslab (160, 96) bf16 : [emb@Wih0 + gb0 (64 rows, vocab-padded) | Whh0 | Wih1 | Whh1]
      mlpw  (128, 32) bf16 : [W1 (96 rows) | BN-folded W2 zero-padded to 32 cols (32 rows)]
      bias  (8, 128)  f32  : rows = gb1, bhn0, bhn1, b1, b2_folded
    """
    f32, bf16 = jnp.float32, jnp.bfloat16
    H = HIDDEN

    def gcat(w):                                    # (3, in, H) -> (in, 3H), gate order r,z,n
        return jnp.concatenate([w[0], w[1], w[2]], axis=-1)

    def gate_bias(l):
        bih, bhh = p[f"bih_{l}"], p[f"bhh_{l}"]
        # b_hr / b_hz fold into the input projection; b_hn stays separate (gated by r).
        return jnp.concatenate([bih[0] + bhh[0], bih[1] + bhh[1], bih[2]], axis=-1), bhh[2]

    wih0, whh0 = gcat(p["wih_0"]), gcat(p["whh_0"])
    wih1, whh1 = gcat(p["wih_1"]), gcat(p["whh_1"])
    gb0, bhn0 = gate_bias(0)
    gb1, bhn1 = gate_bias(1)

    # Precompose embedding lookup with layer-0 input projection (+ its bias) in f32; one bf16 cast.
    embw = p["embedding"] @ wih0 + gb0                               # (VOCAB, 3H)
    embw = jnp.pad(embw, ((0, VOCAB_PAD - VOCAB), (0, 0)))           # padded rows never selected
    wslab = jnp.concatenate([embw, whh0, wih1, whh1], axis=0).astype(bf16)   # (160, 96)

    # BatchNorm1d (eval) folded into the final Linear (scale applied in f32 before the cast).
    scale = p["gamma"] * jax.lax.rsqrt(p["rv"] + 1e-5)               # (1, H)
    shift = p["beta"] - p["rm"] * scale                              # (1, H)
    w2f = p["w2"] * scale.reshape(-1, 1)                             # (H, OUT)
    b2f = shift @ p["w2"] + p["b2"]                                  # (1, OUT)
    w2f_pad = jnp.pad(w2f, ((0, 0), (0, HIDDEN - OUTPUT_DIM)))       # (H, H)
    mlpw = jnp.concatenate([p["w1"], w2f_pad], axis=0).astype(bf16)  # (128, 32)

    bias = jnp.zeros((8, 128), f32)
    bias = bias.at[0, 0:3 * H].set(gb1[0])
    bias = bias.at[1, 0:H].set(bhn0[0])
    bias = bias.at[2, 0:H].set(bhn1[0])
    bias = bias.at[3, 0:H].set(p["b1"][0])
    bias = bias.at[4, 0:OUTPUT_DIM].set(b2f[0])
    return {"wslab": wslab, "mlpw": mlpw, "bias": bias}


# ----------------------------- forward ----------------------------------------------
@jax.jit
def forward(inputs_, kp):
    # inputs_: (3, B, S) int32.  The 3 branches share weights, so they are merged into one
    # batch of 3*B rows (padded to 8 for sublane alignment) and the whole forward runs as
    # ONE pallas_call with 4 packed operands.
    nbr, B, S = inputs_.shape
    ids = inputs_.reshape(nbr * B, S)                        # row = branch*B + b
    pad = NB_PAD - nbr * B
    if pad:
        ids = jnp.concatenate([ids, jnp.zeros((pad, S), jnp.int32)], axis=0)
    ids_tm = jnp.transpose(ids, (1, 0)).reshape(S * NB_PAD, 1)       # time-major id column

    return pl.pallas_call(
        fused_forward_kernel,
        out_shape=jax.ShapeDtypeStruct((B, OUTPUT_DIM), jnp.float32),
        in_specs=[_vmem() for _ in range(4)],
        out_specs=_vmem(),
    )(ids_tm, kp["wslab"], kp["mlpw"], kp["bias"])


# ----------------------------- pure-JAX reference (f32) ------------------------------
def reference_forward(inputs_, p):
    def gru_last_hidden(x_tbe):
        seq = x_tbe
        for l in range(NUM_LAYERS):
            wih, whh = p[f"wih_{l}"], p[f"whh_{l}"]
            bih, bhh = p[f"bih_{l}"], p[f"bhh_{l}"]
            h = jnp.zeros((seq.shape[1], HIDDEN), jnp.float32)
            ys = []
            for t in range(seq.shape[0]):
                x_t = seq[t]
                r = jax.nn.sigmoid(x_t @ wih[0] + bih[0] + h @ whh[0] + bhh[0])
                z = jax.nn.sigmoid(x_t @ wih[1] + bih[1] + h @ whh[1] + bhh[1])
                n = jnp.tanh(x_t @ wih[2] + bih[2] + r * (h @ whh[2] + bhh[2]))
                h = (1.0 - z) * n + z * h
                ys.append(h)
            seq = jnp.stack(ys, axis=0)
        return h

    feats = []
    for i in range(NBRANCH):
        e = p["embedding"][inputs_[i]]                      # (B, S, E)
        feats.append(gru_last_hidden(jnp.transpose(e, (1, 0, 2))))
    x = jnp.concatenate(feats, axis=-1)
    h = jnp.maximum(x @ p["w1"] + p["b1"], 0.0)
    h = (h - p["rm"]) * jax.lax.rsqrt(p["rv"] + 1e-5) * p["gamma"] + p["beta"]
    return h @ p["w2"] + p["b2"]


if __name__ == "__main__":
    key = jax.random.PRNGKey(0)
    params = init_params(key)
    kparams = prepare_kernel_params(params)
    inputs_ = jax.random.randint(jax.random.fold_in(key, 999),
                                 (NBRANCH, BATCH, SEQ), 0, VOCAB, dtype=jnp.int32)

    out = jax.block_until_ready(forward(inputs_, kparams))
    assert out.shape == (BATCH, OUTPUT_DIM)
    assert bool(jnp.all(jnp.isfinite(out)))

    ref = reference_forward(inputs_, params)
    err = float(jnp.max(jnp.abs(out - ref)))
    assert err < 8e-2, f"max abs err vs f32 reference: {err}"
    print("KERNEL_OK")
</pallas_src>

<mosaic_0001>
module attributes {stable_mosaic.version = 11 : i64} {
  func.func @fused_forward_kernel(%arg0: memref<64x1xi32, #tpu.memory_space<vmem>>, %arg1: memref<160x96xbf16, #tpu.memory_space<vmem>>, %arg2: memref<128x32xbf16, #tpu.memory_space<vmem>>, %arg3: memref<8x128xf32, #tpu.memory_space<vmem>>, %arg4: memref<2x4xf32, #tpu.memory_space<vmem>>) attributes {dimension_semantics = [], scalar_prefetch = 0 : i64, scratch_operands = 0 : i64, tpu.core_type = #tpu.core_type<tc>} {
    %c0 = arith.constant 0 : index
    %c0_0 = arith.constant 0 : index
    %0 = vector.load %arg1[%c0, %c0_0] : memref<160x96xbf16, #tpu.memory_space<vmem>>, vector<64x96xbf16>
    %c64 = arith.constant 64 : index
    %c0_1 = arith.constant 0 : index
    %1 = vector.load %arg1[%c64, %c0_1] : memref<160x96xbf16, #tpu.memory_space<vmem>>, vector<32x96xbf16>
    %c96 = arith.constant 96 : index
    %c0_2 = arith.constant 0 : index
    %2 = vector.load %arg1[%c96, %c0_2] : memref<160x96xbf16, #tpu.memory_space<vmem>>, vector<32x96xbf16>
    %c128 = arith.constant 128 : index
    %c0_3 = arith.constant 0 : index
    %3 = vector.load %arg1[%c128, %c0_3] : memref<160x96xbf16, #tpu.memory_space<vmem>>, vector<32x96xbf16>
    %c0_4 = arith.constant 0 : index
    %c0_5 = arith.constant 0 : index
    %4 = vector.load %arg2[%c0_4, %c0_5] : memref<128x32xbf16, #tpu.memory_space<vmem>>, vector<96x32xbf16>
    %c96_6 = arith.constant 96 : index
    %c0_7 = arith.constant 0 : index
    %5 = vector.load %arg2[%c96_6, %c0_7] : memref<128x32xbf16, #tpu.memory_space<vmem>>, vector<32x32xbf16>
    %c0_8 = arith.constant 0 : index
    %c0_9 = arith.constant 0 : index
    %6 = vector.load %arg3[%c0_8, %c0_9] : memref<8x128xf32, #tpu.memory_space<vmem>>, vector<1x96xf32>
    %7 = vector.shape_cast %6 : vector<1x96xf32> to vector<1x96xf32>
    %8 = vector.broadcast %7 : vector<1x96xf32> to vector<8x96xf32>
    %c1 = arith.constant 1 : index
    %c0_10 = arith.constant 0 : index
    %9 = vector.load %arg3[%c1, %c0_10] : memref<8x128xf32, #tpu.memory_space<vmem>>, vector<1x32xf32>
    %10 = vector.shape_cast %9 : vector<1x32xf32> to vector<1x32xf32>
    %11 = vector.broadcast %10 : vector<1x32xf32> to vector<8x32xf32>
    %c2 = arith.constant 2 : index
    %c0_11 = arith.constant 0 : index
    %12 = vector.load %arg3[%c2, %c0_11] : memref<8x128xf32, #tpu.memory_space<vmem>>, vector<1x32xf32>
    %13 = vector.shape_cast %12 : vector<1x32xf32> to vector<1x32xf32>
    %14 = vector.broadcast %13 : vector<1x32xf32> to vector<8x32xf32>
    %c3 = arith.constant 3 : index
    %c0_12 = arith.constant 0 : index
    %15 = vector.load %arg3[%c3, %c0_12] : memref<8x128xf32, #tpu.memory_space<vmem>>, vector<1x32xf32>
    %c4 = arith.constant 4 : index
    %c0_13 = arith.constant 0 : index
    %16 = vector.load %arg3[%c4, %c0_13] : memref<8x128xf32, #tpu.memory_space<vmem>>, vector<1x4xf32>
    %c0_14 = arith.constant 0 : index
    %c0_15 = arith.constant 0 : index
    %17 = vector.load %arg0[%c0_14, %c0_15] : memref<64x1xi32, #tpu.memory_space<vmem>>, vector<64x1xi32>
    %18 = tpu.iota {dimensions = array<i32: 1>} : vector<64x64xi32>
    %19 = vector.broadcast %17 : vector<64x1xi32> to vector<64x64xi32>
    %20 = arith.cmpi eq, %18, %19 : vector<64x64xi32>
    %cst = arith.constant 1.000000e+00 : f32
    %cst_16 = arith.constant 0.000000e+00 : f32
    %21 = vector.broadcast %cst : f32 to vector<64x64xf32>
    %22 = vector.broadcast %cst_16 : f32 to vector<64x64xf32>
    %23 = arith.select %20, %21, %22 : vector<64x64xi1>, vector<64x64xf32>
    %24 = arith.truncf %23 : vector<64x64xf32> to vector<64x64xbf16>
    %cst_17 = arith.constant dense<0.000000e+00> : vector<64x96xf32>
    %25 = tpu.matmul %24, %0, %cst_17 {dimension_numbers = #tpu.dot_dimension_numbers<[1], [0], [0], [1], [0, 0, 1, 1], [], []>} : vector<64x64xbf16>, vector<64x96xbf16>, vector<64x96xf32> -> vector<64x96xf32>
    %cst_18 = arith.constant 0.000000e+00 : f32
    %26 = vector.broadcast %cst_18 : f32 to vector<8x32xf32>
    %cst_19 = arith.constant 0.000000e+00 : f32
    %27 = vector.broadcast %cst_19 : f32 to vector<8x32xf32>
    %28 = vector.extract_strided_slice %25 {offsets = [0, 0], sizes = [8, 96], strides = [1, 1]} : vector<64x96xf32> to vector<8x96xf32>
    %29 = arith.truncf %26 : vector<8x32xf32> to vector<8x32xbf16>
    %cst_20 = arith.constant dense<0.000000e+00> : vector<8x96xf32>
    %30 = tpu.matmul %29, %1, %cst_20 {dimension_numbers = #tpu.dot_dimension_numbers<[1], [0], [0], [1], [0, 0, 1, 1], [], []>} : vector<8x32xbf16>, vector<32x96xbf16>, vector<8x96xf32> -> vector<8x96xf32>
    %31 = vector.extract_strided_slice %28 {offsets = [0, 0], sizes = [8, 64], strides = [1, 1]} : vector<8x96xf32> to vector<8x64xf32>
    %32 = vector.extract_strided_slice %30 {offsets = [0, 0], sizes = [8, 64], strides = [1, 1]} : vector<8x96xf32> to vector<8x64xf32>
    %33 = arith.addf %31, %32 : vector<8x64xf32>
    %34 = arith.negf %33 : vector<8x64xf32>
    %35 = math.exp %34 : vector<8x64xf32>
    %cst_21 = arith.constant 1.000000e+00 : f32
    %36 = vector.broadcast %cst_21 : f32 to vector<8x64xf32>
    %37 = arith.addf %36, %35 : vector<8x64xf32>
    %38 = arith.divf %36, %37 : vector<8x64xf32>
    %39 = vector.extract_strided_slice %38 {offsets = [0, 0], sizes = [8, 32], strides = [1, 1]} : vector<8x64xf32> to vector<8x32xf32>
    %40 = vector.extract_strided_slice %38 {offsets = [0, 32], sizes = [8, 32], strides = [1, 1]} : vector<8x64xf32> to vector<8x32xf32>
    %41 = vector.extract_strided_slice %28 {offsets = [0, 64], sizes = [8, 32], strides = [1, 1]} : vector<8x96xf32> to vector<8x32xf32>
    %42 = vector.extract_strided_slice %30 {offsets = [0, 64], sizes = [8, 32], strides = [1, 1]} : vector<8x96xf32> to vector<8x32xf32>
    %43 = arith.addf %42, %11 : vector<8x32xf32>
    %44 = arith.mulf %39, %43 : vector<8x32xf32>
    %45 = arith.addf %41, %44 : vector<8x32xf32>
    %46 = math.tanh %45 : vector<8x32xf32>
    %47 = arith.subf %26, %46 : vector<8x32xf32>
    %48 = arith.mulf %40, %47 : vector<8x32xf32>
    %49 = arith.addf %46, %48 : vector<8x32xf32>
    %50 = arith.truncf %49 : vector<8x32xf32> to vector<8x32xbf16>
    %cst_22 = arith.constant dense<0.000000e+00> : vector<8x96xf32>
    %51 = tpu.matmul %50, %2, %cst_22 {dimension_numbers = #tpu.dot_dimension_numbers<[1], [0], [0], [1], [0, 0, 1, 1], [], []>} : vector<8x32xbf16>, vector<32x96xbf16>, vector<8x96xf32> -> vector<8x96xf32>
    %52 = arith.addf %51, %8 : vector<8x96xf32>
    %53 = arith.truncf %27 : vector<8x32xf32> to vector<8x32xbf16>
    %cst_23 = arith.constant dense<0.000000e+00> : vector<8x96xf32>
    %54 = tpu.matmul %53, %3, %cst_23 {dimension_numbers = #tpu.dot_dimension_numbers<[1], [0], [0], [1], [0, 0, 1, 1], [], []>} : vector<8x32xbf16>, vector<32x96xbf16>, vector<8x96xf32> -> vector<8x96xf32>
    %55 = vector.extract_strided_slice %52 {offsets = [0, 0], sizes = [8, 64], strides = [1, 1]} : vector<8x96xf32> to vector<8x64xf32>
    %56 = vector.extract_strided_slice %54 {offsets = [0, 0], sizes = [8, 64], strides = [1, 1]} : vector<8x96xf32> to vector<8x64xf32>
    %57 = arith.addf %55, %56 : vector<8x64xf32>
    %58 = arith.negf %57 : vector<8x64xf32>
    %59 = math.exp %58 : vector<8x64xf32>
    %cst_24 = arith.constant 1.000000e+00 : f32
    %60 = vector.broadcast %cst_24 : f32 to vector<8x64xf32>
    %61 = arith.addf %60, %59 : vector<8x64xf32>
    %62 = arith.divf %60, %61 : vector<8x64xf32>
    %63 = vector.extract_strided_slice %62 {offsets = [0, 0], sizes = [8, 32], strides = [1, 1]} : vector<8x64xf32> to vector<8x32xf32>
    %64 = vector.extract_strided_slice %62 {offsets = [0, 32], sizes = [8, 32], strides = [1, 1]} : vector<8x64xf32> to vector<8x32xf32>
    %65 = vector.extract_strided_slice %52 {offsets = [0, 64], sizes = [8, 32], strides = [1, 1]} : vector<8x96xf32> to vector<8x32xf32>
    %66 = vector.extract_strided_slice %54 {offsets = [0, 64], sizes = [8, 32], strides = [1, 1]} : vector<8x96xf32> to vector<8x32xf32>
    %67 = arith.addf %66, %14 : vector<8x32xf32>
    %68 = arith.mulf %63, %67 : vector<8x32xf32>
    %69 = arith.addf %65, %68 : vector<8x32xf32>
    %70 = math.tanh %69 : vector<8x32xf32>
    %71 = arith.subf %27, %70 : vector<8x32xf32>
    %72 = arith.mulf %64, %71 : vector<8x32xf32>
    %73 = arith.addf %70, %72 : vector<8x32xf32>
    %74 = vector.extract_strided_slice %25 {offsets = [8, 0], sizes = [8, 96], strides = [1, 1]} : vector<64x96xf32> to vector<8x96xf32>
    %75 = arith.truncf %49 : vector<8x32xf32> to vector<8x32xbf16>
    %cst_25 = arith.constant dense<0.000000e+00> : vector<8x96xf32>
    %76 = tpu.matmul %75, %1, %cst_25 {dimension_numbers = #tpu.dot_dimension_numbers<[1], [0], [0], [1], [0, 0, 1, 1], [], []>} : vector<8x32xbf16>, vector<32x96xbf16>, vector<8x96xf32> -> vector<8x96xf32>
    %77 = vector.extract_strided_slice %74 {offsets = [0, 0], sizes = [8, 64], strides = [1, 1]} : vector<8x96xf32> to vector<8x64xf32>
    %78 = vector.extract_strided_slice %76 {offsets = [0, 0], sizes = [8, 64], strides = [1, 1]} : vector<8x96xf32> to vector<8x64xf32>
    %79 = arith.addf %77, %78 : vector<8x64xf32>
    %80 = arith.negf %79 : vector<8x64xf32>
    %81 = math.exp %80 : vector<8x64xf32>
    %cst_26 = arith.constant 1.000000e+00 : f32
    %82 = vector.broadcast %cst_26 : f32 to vector<8x64xf32>
    %83 = arith.addf %82, %81 : vector<8x64xf32>
    %84 = arith.divf %82, %83 : vector<8x64xf32>
    %85 = vector.extract_strided_slice %84 {offsets = [0, 0], sizes = [8, 32], strides = [1, 1]} : vector<8x64xf32> to vector<8x32xf32>
    %86 = vector.extract_strided_slice %84 {offsets = [0, 32], sizes = [8, 32], strides = [1, 1]} : vector<8x64xf32> to vector<8x32xf32>
    %87 = vector.extract_strided_slice %74 {offsets = [0, 64], sizes = [8, 32], strides = [1, 1]} : vector<8x96xf32> to vector<8x32xf32>
    %88 = vector.extract_strided_slice %76 {offsets = [0, 64], sizes = [8, 32], strides = [1, 1]} : vector<8x96xf32> to vector<8x32xf32>
    %89 = arith.addf %88, %11 : vector<8x32xf32>
    %90 = arith.mulf %85, %89 : vector<8x32xf32>
    %91 = arith.addf %87, %90 : vector<8x32xf32>
    %92 = math.tanh %91 : vector<8x32xf32>
    %93 = arith.subf %49, %92 : vector<8x32xf32>
    %94 = arith.mulf %86, %93 : vector<8x32xf32>
    %95 = arith.addf %92, %94 : vector<8x32xf32>
    %96 = arith.truncf %95 : vector<8x32xf32> to vector<8x32xbf16>
    %cst_27 = arith.constant dense<0.000000e+00> : vector<8x96xf32>
    %97 = tpu.matmul %96, %2, %cst_27 {dimension_numbers = #tpu.dot_dimension_numbers<[1], [0], [0], [1], [0, 0, 1, 1], [], []>} : vector<8x32xbf16>, vector<32x96xbf16>, vector<8x96xf32> -> vector<8x96xf32>
    %98 = arith.addf %97, %8 : vector<8x96xf32>
    %99 = arith.truncf %73 : vector<8x32xf32> to vector<8x32xbf16>
    %cst_28 = arith.constant dense<0.000000e+00> : vector<8x96xf32>
    %100 = tpu.matmul %99, %3, %cst_28 {dimension_numbers = #tpu.dot_dimension_numbers<[1], [0], [0], [1], [0, 0, 1, 1], [], []>} : vector<8x32xbf16>, vector<32x96xbf16>, vector<8x96xf32> -> vector<8x96xf32>
    %101 = vector.extract_strided_slice %98 {offsets = [0, 0], sizes = [8, 64], strides = [1, 1]} : vector<8x96xf32> to vector<8x64xf32>
    %102 = vector.extract_strided_slice %100 {offsets = [0, 0], sizes = [8, 64], strides = [1, 1]} : vector<8x96xf32> to vector<8x64xf32>
    %103 = arith.addf %101, %102 : vector<8x64xf32>
    %104 = arith.negf %103 : vector<8x64xf32>
    %105 = math.exp %104 : vector<8x64xf32>
    %cst_29 = arith.constant 1.000000e+00 : f32
    %106 = vector.broadcast %cst_29 : f32 to vector<8x64xf32>
    %107 = arith.addf %106, %105 : vector<8x64xf32>
    %108 = arith.divf %106, %107 : vector<8x64xf32>
    %109 = vector.extract_strided_slice %108 {offsets = [0, 0], sizes = [8, 32], strides = [1, 1]} : vector<8x64xf32> to vector<8x32xf32>
    %110 = vector.extract_strided_slice %108 {offsets = [0, 32], sizes = [8, 32], strides = [1, 1]} : vector<8x64xf32> to vector<8x32xf32>
    %111 = vector.extract_strided_slice %98 {offsets = [0, 64], sizes = [8, 32], strides = [1, 1]} : vector<8x96xf32> to vector<8x32xf32>
    %112 = vector.extract_strided_slice %100 {offsets = [0, 64], sizes = [8, 32], strides = [1, 1]} : vector<8x96xf32> to vector<8x32xf32>
    %113 = arith.addf %112, %14 : vector<8x32xf32>
    %114 = arith.mulf %109, %113 : vector<8x32xf32>
    %115 = arith.addf %111, %114 : vector<8x32xf32>
    %116 = math.tanh %115 : vector<8x32xf32>
    %117 = arith.subf %73, %116 : vector<8x32xf32>
    %118 = arith.mulf %110, %117 : vector<8x32xf32>
    %119 = arith.addf %116, %118 : vector<8x32xf32>
    %120 = vector.extract_strided_slice %25 {offsets = [16, 0], sizes = [8, 96], strides = [1, 1]} : vector<64x96xf32> to vector<8x96xf32>
    %121 = arith.truncf %95 : vector<8x32xf32> to vector<8x32xbf16>
    %cst_30 = arith.constant dense<0.000000e+00> : vector<8x96xf32>
    %122 = tpu.matmul %121, %1, %cst_30 {dimension_numbers = #tpu.dot_dimension_numbers<[1], [0], [0], [1], [0, 0, 1, 1], [], []>} : vector<8x32xbf16>, vector<32x96xbf16>, vector<8x96xf32> -> vector<8x96xf32>
    %123 = vector.extract_strided_slice %120 {offsets = [0, 0], sizes = [8, 64], strides = [1, 1]} : vector<8x96xf32> to vector<8x64xf32>
    %124 = vector.extract_strided_slice %122 {offsets = [0, 0], sizes = [8, 64], strides = [1, 1]} : vector<8x96xf32> to vector<8x64xf32>
    %125 = arith.addf %123, %124 : vector<8x64xf32>
    %126 = arith.negf %125 : vector<8x64xf32>
    %127 = math.exp %126 : vector<8x64xf32>
    %cst_31 = arith.constant 1.000000e+00 : f32
    %128 = vector.broadcast %cst_31 : f32 to vector<8x64xf32>
    %129 = arith.addf %128, %127 : vector<8x64xf32>
    %130 = arith.divf %128, %129 : vector<8x64xf32>
    %131 = vector.extract_strided_slice %130 {offsets = [0, 0], sizes = [8, 32], strides = [1, 1]} : vector<8x64xf32> to vector<8x32xf32>
    %132 = vector.extract_strided_slice %130 {offsets = [0, 32], sizes = [8, 32], strides = [1, 1]} : vector<8x64xf32> to vector<8x32xf32>
    %133 = vector.extract_strided_slice %120 {offsets = [0, 64], sizes = [8, 32], strides = [1, 1]} : vector<8x96xf32> to vector<8x32xf32>
    %134 = vector.extract_strided_slice %122 {offsets = [0, 64], sizes = [8, 32], strides = [1, 1]} : vector<8x96xf32> to vector<8x32xf32>
    %135 = arith.addf %134, %11 : vector<8x32xf32>
    %136 = arith.mulf %131, %135 : vector<8x32xf32>
    %137 = arith.addf %133, %136 : vector<8x32xf32>
    %138 = math.tanh %137 : vector<8x32xf32>
    %139 = arith.subf %95, %138 : vector<8x32xf32>
    %140 = arith.mulf %132, %139 : vector<8x32xf32>
    %141 = arith.addf %138, %140 : vector<8x32xf32>
    %142 = arith.truncf %141 : vector<8x32xf32> to vector<8x32xbf16>
    %cst_32 = arith.constant dense<0.000000e+00> : vector<8x96xf32>
    %143 = tpu.matmul %142, %2, %cst_32 {dimension_numbers = #tpu.dot_dimension_numbers<[1], [0], [0], [1], [0, 0, 1, 1], [], []>} : vector<8x32xbf16>, vector<32x96xbf16>, vector<8x96xf32> -> vector<8x96xf32>
    %144 = arith.addf %143, %8 : vector<8x96xf32>
    %145 = arith.truncf %119 : vector<8x32xf32> to vector<8x32xbf16>
    %cst_33 = arith.constant dense<0.000000e+00> : vector<8x96xf32>
    %146 = tpu.matmul %145, %3, %cst_33 {dimension_numbers = #tpu.dot_dimension_numbers<[1], [0], [0], [1], [0, 0, 1, 1], [], []>} : vector<8x32xbf16>, vector<32x96xbf16>, vector<8x96xf32> -> vector<8x96xf32>
    %147 = vector.extract_strided_slice %144 {offsets = [0, 0], sizes = [8, 64], strides = [1, 1]} : vector<8x96xf32> to vector<8x64xf32>
    %148 = vector.extract_strided_slice %146 {offsets = [0, 0], sizes = [8, 64], strides = [1, 1]} : vector<8x96xf32> to vector<8x64xf32>
    %149 = arith.addf %147, %148 : vector<8x64xf32>
    %150 = arith.negf %149 : vector<8x64xf32>
    %151 = math.exp %150 : vector<8x64xf32>
    %cst_34 = arith.constant 1.000000e+00 : f32
    %152 = vector.broadcast %cst_34 : f32 to vector<8x64xf32>
    %153 = arith.addf %152, %151 : vector<8x64xf32>
    %154 = arith.divf %152, %153 : vector<8x64xf32>
    %155 = vector.extract_strided_slice %154 {offsets = [0, 0], sizes = [8, 32], strides = [1, 1]} : vector<8x64xf32> to vector<8x32xf32>
    %156 = vector.extract_strided_slice %154 {offsets = [0, 32], sizes = [8, 32], strides = [1, 1]} : vector<8x64xf32> to vector<8x32xf32>
    %157 = vector.extract_strided_slice %144 {offsets = [0, 64], sizes = [8, 32], strides = [1, 1]} : vector<8x96xf32> to vector<8x32xf32>
    %158 = vector.extract_strided_slice %146 {offsets = [0, 64], sizes = [8, 32], strides = [1, 1]} : vector<8x96xf32> to vector<8x32xf32>
    %159 = arith.addf %158, %14 : vector<8x32xf32>
    %160 = arith.mulf %155, %159 : vector<8x32xf32>
    %161 = arith.addf %157, %160 : vector<8x32xf32>
    %162 = math.tanh %161 : vector<8x32xf32>
    %163 = arith.subf %119, %162 : vector<8x32xf32>
    %164 = arith.mulf %156, %163 : vector<8x32xf32>
    %165 = arith.addf %162, %164 : vector<8x32xf32>
    %166 = vector.extract_strided_slice %25 {offsets = [24, 0], sizes = [8, 96], strides = [1, 1]} : vector<64x96xf32> to vector<8x96xf32>
    %167 = arith.truncf %141 : vector<8x32xf32> to vector<8x32xbf16>
    %cst_35 = arith.constant dense<0.000000e+00> : vector<8x96xf32>
    %168 = tpu.matmul %167, %1, %cst_35 {dimension_numbers = #tpu.dot_dimension_numbers<[1], [0], [0], [1], [0, 0, 1, 1], [], []>} : vector<8x32xbf16>, vector<32x96xbf16>, vector<8x96xf32> -> vector<8x96xf32>
    %169 = vector.extract_strided_slice %166 {offsets = [0, 0], sizes = [8, 64], strides = [1, 1]} : vector<8x96xf32> to vector<8x64xf32>
    %170 = vector.extract_strided_slice %168 {offsets = [0, 0], sizes = [8, 64], strides = [1, 1]} : vector<8x96xf32> to vector<8x64xf32>
    %171 = arith.addf %169, %170 : vector<8x64xf32>
    %172 = arith.negf %171 : vector<8x64xf32>
    %173 = math.exp %172 : vector<8x64xf32>
    %cst_36 = arith.constant 1.000000e+00 : f32
    %174 = vector.broadcast %cst_36 : f32 to vector<8x64xf32>
    %175 = arith.addf %174, %173 : vector<8x64xf32>
    %176 = arith.divf %174, %175 : vector<8x64xf32>
    %177 = vector.extract_strided_slice %176 {offsets = [0, 0], sizes = [8, 32], strides = [1, 1]} : vector<8x64xf32> to vector<8x32xf32>
    %178 = vector.extract_strided_slice %176 {offsets = [0, 32], sizes = [8, 32], strides = [1, 1]} : vector<8x64xf32> to vector<8x32xf32>
    %179 = vector.extract_strided_slice %166 {offsets = [0, 64], sizes = [8, 32], strides = [1, 1]} : vector<8x96xf32> to vector<8x32xf32>
    %180 = vector.extract_strided_slice %168 {offsets = [0, 64], sizes = [8, 32], strides = [1, 1]} : vector<8x96xf32> to vector<8x32xf32>
    %181 = arith.addf %180, %11 : vector<8x32xf32>
    %182 = arith.mulf %177, %181 : vector<8x32xf32>
    %183 = arith.addf %179, %182 : vector<8x32xf32>
    %184 = math.tanh %183 : vector<8x32xf32>
    %185 = arith.subf %141, %184 : vector<8x32xf32>
    %186 = arith.mulf %178, %185 : vector<8x32xf32>
    %187 = arith.addf %184, %186 : vector<8x32xf32>
    %188 = arith.truncf %187 : vector<8x32xf32> to vector<8x32xbf16>
    %cst_37 = arith.constant dense<0.000000e+00> : vector<8x96xf32>
    %189 = tpu.matmul %188, %2, %cst_37 {dimension_numbers = #tpu.dot_dimension_numbers<[1], [0], [0], [1], [0, 0, 1, 1], [], []>} : vector<8x32xbf16>, vector<32x96xbf16>, vector<8x96xf32> -> vector<8x96xf32>
    %190 = arith.addf %189, %8 : vector<8x96xf32>
    %191 = arith.truncf %165 : vector<8x32xf32> to vector<8x32xbf16>
    %cst_38 = arith.constant dense<0.000000e+00> : vector<8x96xf32>
    %192 = tpu.matmul %191, %3, %cst_38 {dimension_numbers = #tpu.dot_dimension_numbers<[1], [0], [0], [1], [0, 0, 1, 1], [], []>} : vector<8x32xbf16>, vector<32x96xbf16>, vector<8x96xf32> -> vector<8x96xf32>
    %193 = vector.extract_strided_slice %190 {offsets = [0, 0], sizes = [8, 64], strides = [1, 1]} : vector<8x96xf32> to vector<8x64xf32>
    %194 = vector.extract_strided_slice %192 {offsets = [0, 0], sizes = [8, 64], strides = [1, 1]} : vector<8x96xf32> to vector<8x64xf32>
    %195 = arith.addf %193, %194 : vector<8x64xf32>
    %196 = arith.negf %195 : vector<8x64xf32>
    %197 = math.exp %196 : vector<8x64xf32>
    %cst_39 = arith.constant 1.000000e+00 : f32
    %198 = vector.broadcast %cst_39 : f32 to vector<8x64xf32>
    %199 = arith.addf %198, %197 : vector<8x64xf32>
    %200 = arith.divf %198, %199 : vector<8x64xf32>
    %201 = vector.extract_strided_slice %200 {offsets = [0, 0], sizes = [8, 32], strides = [1, 1]} : vector<8x64xf32> to vector<8x32xf32>
    %202 = vector.extract_strided_slice %200 {offsets = [0, 32], sizes = [8, 32], strides = [1, 1]} : vector<8x64xf32> to vector<8x32xf32>
    %203 = vector.extract_strided_slice %190 {offsets = [0, 64], sizes = [8, 32], strides = [1, 1]} : vector<8x96xf32> to vector<8x32xf32>
    %204 = vector.extract_strided_slice %192 {offsets = [0, 64], sizes = [8, 32], strides = [1, 1]} : vector<8x96xf32> to vector<8x32xf32>
    %205 = arith.addf %204, %14 : vector<8x32xf32>
    %206 = arith.mulf %201, %205 : vector<8x32xf32>
    %207 = arith.addf %203, %206 : vector<8x32xf32>
    %208 = math.tanh %207 : vector<8x32xf32>
    %209 = arith.subf %165, %208 : vector<8x32xf32>
    %210 = arith.mulf %202, %209 : vector<8x32xf32>
    %211 = arith.addf %208, %210 : vector<8x32xf32>
    %212 = vector.extract_strided_slice %25 {offsets = [32, 0], sizes = [8, 96], strides = [1, 1]} : vector<64x96xf32> to vector<8x96xf32>
    %213 = arith.truncf %187 : vector<8x32xf32> to vector<8x32xbf16>
    %cst_40 = arith.constant dense<0.000000e+00> : vector<8x96xf32>
    %214 = tpu.matmul %213, %1, %cst_40 {dimension_numbers = #tpu.dot_dimension_numbers<[1], [0], [0], [1], [0, 0, 1, 1], [], []>} : vector<8x32xbf16>, vector<32x96xbf16>, vector<8x96xf32> -> vector<8x96xf32>
    %215 = vector.extract_strided_slice %212 {offsets = [0, 0], sizes = [8, 64], strides = [1, 1]} : vector<8x96xf32> to vector<8x64xf32>
    %216 = vector.extract_strided_slice %214 {offsets = [0, 0], sizes = [8, 64], strides = [1, 1]} : vector<8x96xf32> to vector<8x64xf32>
    %217 = arith.addf %215, %216 : vector<8x64xf32>
    %218 = arith.negf %217 : vector<8x64xf32>
    %219 = math.exp %218 : vector<8x64xf32>
    %cst_41 = arith.constant 1.000000e+00 : f32
    %220 = vector.broadcast %cst_41 : f32 to vector<8x64xf32>
    %221 = arith.addf %220, %219 : vector<8x64xf32>
    %222 = arith.divf %220, %221 : vector<8x64xf32>
    %223 = vector.extract_strided_slice %222 {offsets = [0, 0], sizes = [8, 32], strides = [1, 1]} : vector<8x64xf32> to vector<8x32xf32>
    %224 = vector.extract_strided_slice %222 {offsets = [0, 32], sizes = [8, 32], strides = [1, 1]} : vector<8x64xf32> to vector<8x32xf32>
    %225 = vector.extract_strided_slice %212 {offsets = [0, 64], sizes = [8, 32], strides = [1, 1]} : vector<8x96xf32> to vector<8x32xf32>
    %226 = vector.extract_strided_slice %214 {offsets = [0, 64], sizes = [8, 32], strides = [1, 1]} : vector<8x96xf32> to vector<8x32xf32>
    %227 = arith.addf %226, %11 : vector<8x32xf32>
    %228 = arith.mulf %223, %227 : vector<8x32xf32>
    %229 = arith.addf %225, %228 : vector<8x32xf32>
    %230 = math.tanh %229 : vector<8x32xf32>
    %231 = arith.subf %187, %230 : vector<8x32xf32>
    %232 = arith.mulf %224, %231 : vector<8x32xf32>
    %233 = arith.addf %230, %232 : vector<8x32xf32>
    %234 = arith.truncf %233 : vector<8x32xf32> to vector<8x32xbf16>
    %cst_42 = arith.constant dense<0.000000e+00> : vector<8x96xf32>
    %235 = tpu.matmul %234, %2, %cst_42 {dimension_numbers = #tpu.dot_dimension_numbers<[1], [0], [0], [1], [0, 0, 1, 1], [], []>} : vector<8x32xbf16>, vector<32x96xbf16>, vector<8x96xf32> -> vector<8x96xf32>
    %236 = arith.addf %235, %8 : vector<8x96xf32>
    %237 = arith.truncf %211 : vector<8x32xf32> to vector<8x32xbf16>
    %cst_43 = arith.constant dense<0.000000e+00> : vector<8x96xf32>
    %238 = tpu.matmul %237, %3, %cst_43 {dimension_numbers = #tpu.dot_dimension_numbers<[1], [0], [0], [1], [0, 0, 1, 1], [], []>} : vector<8x32xbf16>, vector<32x96xbf16>, vector<8x96xf32> -> vector<8x96xf32>
    %239 = vector.extract_strided_slice %236 {offsets = [0, 0], sizes = [8, 64], strides = [1, 1]} : vector<8x96xf32> to vector<8x64xf32>
    %240 = vector.extract_strided_slice %238 {offsets = [0, 0], sizes = [8, 64], strides = [1, 1]} : vector<8x96xf32> to vector<8x64xf32>
    %241 = arith.addf %239, %240 : vector<8x64xf32>
    %242 = arith.negf %241 : vector<8x64xf32>
    %243 = math.exp %242 : vector<8x64xf32>
    %cst_44 = arith.constant 1.000000e+00 : f32
    %244 = vector.broadcast %cst_44 : f32 to vector<8x64xf32>
    %245 = arith.addf %244, %243 : vector<8x64xf32>
    %246 = arith.divf %244, %245 : vector<8x64xf32>
    %247 = vector.extract_strided_slice %246 {offsets = [0, 0], sizes = [8, 32], strides = [1, 1]} : vector<8x64xf32> to vector<8x32xf32>
    %248 = vector.extract_strided_slice %246 {offsets = [0, 32], sizes = [8, 32], strides = [1, 1]} : vector<8x64xf32> to vector<8x32xf32>
    %249 = vector.extract_strided_slice %236 {offsets = [0, 64], sizes = [8, 32], strides = [1, 1]} : vector<8x96xf32> to vector<8x32xf32>
    %250 = vector.extract_strided_slice %238 {offsets = [0, 64], sizes = [8, 32], strides = [1, 1]} : vector<8x96xf32> to vector<8x32xf32>
    %251 = arith.addf %250, %14 : vector<8x32xf32>
    %252 = arith.mulf %247, %251 : vector<8x32xf32>
    %253 = arith.addf %249, %252 : vector<8x32xf32>
    %254 = math.tanh %253 : vector<8x32xf32>
    %255 = arith.subf %211, %254 : vector<8x32xf32>
    %256 = arith.mulf %248, %255 : vector<8x32xf32>
    %257 = arith.addf %254, %256 : vector<8x32xf32>
    %258 = vector.extract_strided_slice %25 {offsets = [40, 0], sizes = [8, 96], strides = [1, 1]} : vector<64x96xf32> to vector<8x96xf32>
    %259 = arith.truncf %233 : vector<8x32xf32> to vector<8x32xbf16>
    %cst_45 = arith.constant dense<0.000000e+00> : vector<8x96xf32>
    %260 = tpu.matmul %259, %1, %cst_45 {dimension_numbers = #tpu.dot_dimension_numbers<[1], [0], [0], [1], [0, 0, 1, 1], [], []>} : vector<8x32xbf16>, vector<32x96xbf16>, vector<8x96xf32> -> vector<8x96xf32>
    %261 = vector.extract_strided_slice %258 {offsets = [0, 0], sizes = [8, 64], strides = [1, 1]} : vector<8x96xf32> to vector<8x64xf32>
    %262 = vector.extract_strided_slice %260 {offsets = [0, 0], sizes = [8, 64], strides = [1, 1]} : vector<8x96xf32> to vector<8x64xf32>
    %263 = arith.addf %261, %262 : vector<8x64xf32>
    %264 = arith.negf %263 : vector<8x64xf32>
    %265 = math.exp %264 : vector<8x64xf32>
    %cst_46 = arith.constant 1.000000e+00 : f32
    %266 = vector.broadcast %cst_46 : f32 to vector<8x64xf32>
    %267 = arith.addf %266, %265 : vector<8x64xf32>
    %268 = arith.divf %266, %267 : vector<8x64xf32>
    %269 = vector.extract_strided_slice %268 {offsets = [0, 0], sizes = [8, 32], strides = [1, 1]} : vector<8x64xf32> to vector<8x32xf32>
    %270 = vector.extract_strided_slice %268 {offsets = [0, 32], sizes = [8, 32], strides = [1, 1]} : vector<8x64xf32> to vector<8x32xf32>
    %271 = vector.extract_strided_slice %258 {offsets = [0, 64], sizes = [8, 32], strides = [1, 1]} : vector<8x96xf32> to vector<8x32xf32>
    %272 = vector.extract_strided_slice %260 {offsets = [0, 64], sizes = [8, 32], strides = [1, 1]} : vector<8x96xf32> to vector<8x32xf32>
    %273 = arith.addf %272, %11 : vector<8x32xf32>
    %274 = arith.mulf %269, %273 : vector<8x32xf32>
    %275 = arith.addf %271, %274 : vector<8x32xf32>
    %276 = math.tanh %275 : vector<8x32xf32>
    %277 = arith.subf %233, %276 : vector<8x32xf32>
    %278 = arith.mulf %270, %277 : vector<8x32xf32>
    %279 = arith.addf %276, %278 : vector<8x32xf32>
    %280 = arith.truncf %279 : vector<8x32xf32> to vector<8x32xbf16>
    %cst_47 = arith.constant dense<0.000000e+00> : vector<8x96xf32>
    %281 = tpu.matmul %280, %2, %cst_47 {dimension_numbers = #tpu.dot_dimension_numbers<[1], [0], [0], [1], [0, 0, 1, 1], [], []>} : vector<8x32xbf16>, vector<32x96xbf16>, vector<8x96xf32> -> vector<8x96xf32>
    %282 = arith.addf %281, %8 : vector<8x96xf32>
    %283 = arith.truncf %257 : vector<8x32xf32> to vector<8x32xbf16>
    %cst_48 = arith.constant dense<0.000000e+00> : vector<8x96xf32>
    %284 = tpu.matmul %283, %3, %cst_48 {dimension_numbers = #tpu.dot_dimension_numbers<[1], [0], [0], [1], [0, 0, 1, 1], [], []>} : vector<8x32xbf16>, vector<32x96xbf16>, vector<8x96xf32> -> vector<8x96xf32>
    %285 = vector.extract_strided_slice %282 {offsets = [0, 0], sizes = [8, 64], strides = [1, 1]} : vector<8x96xf32> to vector<8x64xf32>
    %286 = vector.extract_strided_slice %284 {offsets = [0, 0], sizes = [8, 64], strides = [1, 1]} : vector<8x96xf32> to vector<8x64xf32>
    %287 = arith.addf %285, %286 : vector<8x64xf32>
    %288 = arith.negf %287 : vector<8x64xf32>
    %289 = math.exp %288 : vector<8x64xf32>
    %cst_49 = arith.constant 1.000000e+00 : f32
    %290 = vector.broadcast %cst_49 : f32 to vector<8x64xf32>
    %291 = arith.addf %290, %289 : vector<8x64xf32>
    %292 = arith.divf %290, %291 : vector<8x64xf32>
    %293 = vector.extract_strided_slice %292 {offsets = [0, 0], sizes = [8, 32], strides = [1, 1]} : vector<8x64xf32> to vector<8x32xf32>
    %294 = vector.extract_strided_slice %292 {offsets = [0, 32], sizes = [8, 32], strides = [1, 1]} : vector<8x64xf32> to vector<8x32xf32>
    %295 = vector.extract_strided_slice %282 {offsets = [0, 64], sizes = [8, 32], strides = [1, 1]} : vector<8x96xf32> to vector<8x32xf32>
    %296 = vector.extract_strided_slice %284 {offsets = [0, 64], sizes = [8, 32], strides = [1, 1]} : vector<8x96xf32> to vector<8x32xf32>
    %297 = arith.addf %296, %14 : vector<8x32xf32>
    %298 = arith.mulf %293, %297 : vector<8x32xf32>
    %299 = arith.addf %295, %298 : vector<8x32xf32>
    %300 = math.tanh %299 : vector<8x32xf32>
    %301 = arith.subf %257, %300 : vector<8x32xf32>
    %302 = arith.mulf %294, %301 : vector<8x32xf32>
    %303 = arith.addf %300, %302 : vector<8x32xf32>
    %304 = vector.extract_strided_slice %25 {offsets = [48, 0], sizes = [8, 96], strides = [1, 1]} : vector<64x96xf32> to vector<8x96xf32>
    %305 = arith.truncf %279 : vector<8x32xf32> to vector<8x32xbf16>
    %cst_50 = arith.constant dense<0.000000e+00> : vector<8x96xf32>
    %306 = tpu.matmul %305, %1, %cst_50 {dimension_numbers = #tpu.dot_dimension_numbers<[1], [0], [0], [1], [0, 0, 1, 1], [], []>} : vector<8x32xbf16>, vector<32x96xbf16>, vector<8x96xf32> -> vector<8x96xf32>
    %307 = vector.extract_strided_slice %304 {offsets = [0, 0], sizes = [8, 64], strides = [1, 1]} : vector<8x96xf32> to vector<8x64xf32>
    %308 = vector.extract_strided_slice %306 {offsets = [0, 0], sizes = [8, 64], strides = [1, 1]} : vector<8x96xf32> to vector<8x64xf32>
    %309 = arith.addf %307, %308 : vector<8x64xf32>
    %310 = arith.negf %309 : vector<8x64xf32>
    %311 = math.exp %310 : vector<8x64xf32>
    %cst_51 = arith.constant 1.000000e+00 : f32
    %312 = vector.broadcast %cst_51 : f32 to vector<8x64xf32>
    %313 = arith.addf %312, %311 : vector<8x64xf32>
    %314 = arith.divf %312, %313 : vector<8x64xf32>
    %315 = vector.extract_strided_slice %314 {offsets = [0, 0], sizes = [8, 32], strides = [1, 1]} : vector<8x64xf32> to vector<8x32xf32>
    %316 = vector.extract_strided_slice %314 {offsets = [0, 32], sizes = [8, 32], strides = [1, 1]} : vector<8x64xf32> to vector<8x32xf32>
    %317 = vector.extract_strided_slice %304 {offsets = [0, 64], sizes = [8, 32], strides = [1, 1]} : vector<8x96xf32> to vector<8x32xf32>
    %318 = vector.extract_strided_slice %306 {offsets = [0, 64], sizes = [8, 32], strides = [1, 1]} : vector<8x96xf32> to vector<8x32xf32>
    %319 = arith.addf %318, %11 : vector<8x32xf32>
    %320 = arith.mulf %315, %319 : vector<8x32xf32>
    %321 = arith.addf %317, %320 : vector<8x32xf32>
    %322 = math.tanh %321 : vector<8x32xf32>
    %323 = arith.subf %279, %322 : vector<8x32xf32>
    %324 = arith.mulf %316, %323 : vector<8x32xf32>
    %325 = arith.addf %322, %324 : vector<8x32xf32>
    %326 = arith.truncf %325 : vector<8x32xf32> to vector<8x32xbf16>
    %cst_52 = arith.constant dense<0.000000e+00> : vector<8x96xf32>
    %327 = tpu.matmul %326, %2, %cst_52 {dimension_numbers = #tpu.dot_dimension_numbers<[1], [0], [0], [1], [0, 0, 1, 1], [], []>} : vector<8x32xbf16>, vector<32x96xbf16>, vector<8x96xf32> -> vector<8x96xf32>
    %328 = arith.addf %327, %8 : vector<8x96xf32>
    %329 = arith.truncf %303 : vector<8x32xf32> to vector<8x32xbf16>
    %cst_53 = arith.constant dense<0.000000e+00> : vector<8x96xf32>
    %330 = tpu.matmul %329, %3, %cst_53 {dimension_numbers = #tpu.dot_dimension_numbers<[1], [0], [0], [1], [0, 0, 1, 1], [], []>} : vector<8x32xbf16>, vector<32x96xbf16>, vector<8x96xf32> -> vector<8x96xf32>
    %331 = vector.extract_strided_slice %328 {offsets = [0, 0], sizes = [8, 64], strides = [1, 1]} : vector<8x96xf32> to vector<8x64xf32>
    %332 = vector.extract_strided_slice %330 {offsets = [0, 0], sizes = [8, 64], strides = [1, 1]} : vector<8x96xf32> to vector<8x64xf32>
    %333 = arith.addf %331, %332 : vector<8x64xf32>
    %334 = arith.negf %333 : vector<8x64xf32>
    %335 = math.exp %334 : vector<8x64xf32>
    %cst_54 = arith.constant 1.000000e+00 : f32
    %336 = vector.broadcast %cst_54 : f32 to vector<8x64xf32>
    %337 = arith.addf %336, %335 : vector<8x64xf32>
    %338 = arith.divf %336, %337 : vector<8x64xf32>
    %339 = vector.extract_strided_slice %338 {offsets = [0, 0], sizes = [8, 32], strides = [1, 1]} : vector<8x64xf32> to vector<8x32xf32>
    %340 = vector.extract_strided_slice %338 {offsets = [0, 32], sizes = [8, 32], strides = [1, 1]} : vector<8x64xf32> to vector<8x32xf32>
    %341 = vector.extract_strided_slice %328 {offsets = [0, 64], sizes = [8, 32], strides = [1, 1]} : vector<8x96xf32> to vector<8x32xf32>
    %342 = vector.extract_strided_slice %330 {offsets = [0, 64], sizes = [8, 32], strides = [1, 1]} : vector<8x96xf32> to vector<8x32xf32>
    %343 = arith.addf %342, %14 : vector<8x32xf32>
    %344 = arith.mulf %339, %343 : vector<8x32xf32>
    %345 = arith.addf %341, %344 : vector<8x32xf32>
    %346 = math.tanh %345 : vector<8x32xf32>
    %347 = arith.subf %303, %346 : vector<8x32xf32>
    %348 = arith.mulf %340, %347 : vector<8x32xf32>
    %349 = arith.addf %346, %348 : vector<8x32xf32>
    %350 = vector.extract_strided_slice %25 {offsets = [56, 0], sizes = [8, 96], strides = [1, 1]} : vector<64x96xf32> to vector<8x96xf32>
    %351 = arith.truncf %325 : vector<8x32xf32> to vector<8x32xbf16>
    %cst_55 = arith.constant dense<0.000000e+00> : vector<8x96xf32>
    %352 = tpu.matmul %351, %1, %cst_55 {dimension_numbers = #tpu.dot_dimension_numbers<[1], [0], [0], [1], [0, 0, 1, 1], [], []>} : vector<8x32xbf16>, vector<32x96xbf16>, vector<8x96xf32> -> vector<8x96xf32>
    %353 = vector.extract_strided_slice %350 {offsets = [0, 0], sizes = [8, 64], strides = [1, 1]} : vector<8x96xf32> to vector<8x64xf32>
    %354 = vector.extract_strided_slice %352 {offsets = [0, 0], sizes = [8, 64], strides = [1, 1]} : vector<8x96xf32> to vector<8x64xf32>
    %355 = arith.addf %353, %354 : vector<8x64xf32>
    %356 = arith.negf %355 : vector<8x64xf32>
    %357 = math.exp %356 : vector<8x64xf32>
    %cst_56 = arith.constant 1.000000e+00 : f32
    %358 = vector.broadcast %cst_56 : f32 to vector<8x64xf32>
    %359 = arith.addf %358, %357 : vector<8x64xf32>
    %360 = arith.divf %358, %359 : vector<8x64xf32>
    %361 = vector.extract_strided_slice %360 {offsets = [0, 0], sizes = [8, 32], strides = [1, 1]} : vector<8x64xf32> to vector<8x32xf32>
    %362 = vector.extract_strided_slice %360 {offsets = [0, 32], sizes = [8, 32], strides = [1, 1]} : vector<8x64xf32> to vector<8x32xf32>
    %363 = vector.extract_strided_slice %350 {offsets = [0, 64], sizes = [8, 32], strides = [1, 1]} : vector<8x96xf32> to vector<8x32xf32>
    %364 = vector.extract_strided_slice %352 {offsets = [0, 64], sizes = [8, 32], strides = [1, 1]} : vector<8x96xf32> to vector<8x32xf32>
    %365 = arith.addf %364, %11 : vector<8x32xf32>
    %366 = arith.mulf %361, %365 : vector<8x32xf32>
    %367 = arith.addf %363, %366 : vector<8x32xf32>
    %368 = math.tanh %367 : vector<8x32xf32>
    %369 = arith.subf %325, %368 : vector<8x32xf32>
    %370 = arith.mulf %362, %369 : vector<8x32xf32>
    %371 = arith.addf %368, %370 : vector<8x32xf32>
    %372 = arith.truncf %371 : vector<8x32xf32> to vector<8x32xbf16>
    %cst_57 = arith.constant dense<0.000000e+00> : vector<8x96xf32>
    %373 = tpu.matmul %372, %2, %cst_57 {dimension_numbers = #tpu.dot_dimension_numbers<[1], [0], [0], [1], [0, 0, 1, 1], [], []>} : vector<8x32xbf16>, vector<32x96xbf16>, vector<8x96xf32> -> vector<8x96xf32>
    %374 = arith.addf %373, %8 : vector<8x96xf32>
    %375 = arith.truncf %349 : vector<8x32xf32> to vector<8x32xbf16>
    %cst_58 = arith.constant dense<0.000000e+00> : vector<8x96xf32>
    %376 = tpu.matmul %375, %3, %cst_58 {dimension_numbers = #tpu.dot_dimension_numbers<[1], [0], [0], [1], [0, 0, 1, 1], [], []>} : vector<8x32xbf16>, vector<32x96xbf16>, vector<8x96xf32> -> vector<8x96xf32>
    %377 = vector.extract_strided_slice %374 {offsets = [0, 0], sizes = [8, 64], strides = [1, 1]} : vector<8x96xf32> to vector<8x64xf32>
    %378 = vector.extract_strided_slice %376 {offsets = [0, 0], sizes = [8, 64], strides = [1, 1]} : vector<8x96xf32> to vector<8x64xf32>
    %379 = arith.addf %377, %378 : vector<8x64xf32>
    %380 = arith.negf %379 : vector<8x64xf32>
    %381 = math.exp %380 : vector<8x64xf32>
    %cst_59 = arith.constant 1.000000e+00 : f32
    %382 = vector.broadcast %cst_59 : f32 to vector<8x64xf32>
    %383 = arith.addf %382, %381 : vector<8x64xf32>
    %384 = arith.divf %382, %383 : vector<8x64xf32>
    %385 = vector.extract_strided_slice %384 {offsets = [0, 0], sizes = [8, 32], strides = [1, 1]} : vector<8x64xf32> to vector<8x32xf32>
    %386 = vector.extract_strided_slice %384 {offsets = [0, 32], sizes = [8, 32], strides = [1, 1]} : vector<8x64xf32> to vector<8x32xf32>
    %387 = vector.extract_strided_slice %374 {offsets = [0, 64], sizes = [8, 32], strides = [1, 1]} : vector<8x96xf32> to vector<8x32xf32>
    %388 = vector.extract_strided_slice %376 {offsets = [0, 64], sizes = [8, 32], strides = [1, 1]} : vector<8x96xf32> to vector<8x32xf32>
    %389 = arith.addf %388, %14 : vector<8x32xf32>
    %390 = arith.mulf %385, %389 : vector<8x32xf32>
    %391 = arith.addf %387, %390 : vector<8x32xf32>
    %392 = math.tanh %391 : vector<8x32xf32>
    %393 = arith.subf %349, %392 : vector<8x32xf32>
    %394 = arith.mulf %386, %393 : vector<8x32xf32>
    %395 = arith.addf %392, %394 : vector<8x32xf32>
    %396 = vector.extract_strided_slice %395 {offsets = [0, 0], sizes = [2, 32], strides = [1, 1]} : vector<8x32xf32> to vector<2x32xf32>
    %397 = vector.extract_strided_slice %395 {offsets = [2, 0], sizes = [2, 32], strides = [1, 1]} : vector<8x32xf32> to vector<2x32xf32>
    %398 = vector.extract_strided_slice %395 {offsets = [4, 0], sizes = [2, 32], strides = [1, 1]} : vector<8x32xf32> to vector<2x32xf32>
    %399 = tpu.concatenate %396, %397, %398 in 1 : vector<2x32xf32>, vector<2x32xf32>, vector<2x32xf32> -> vector<2x96xf32>
    %400 = arith.truncf %399 : vector<2x96xf32> to vector<2x96xbf16>
    %cst_60 = arith.constant dense<0.000000e+00> : vector<2x32xf32>
    %401 = tpu.matmul %400, %4, %cst_60 {dimension_numbers = #tpu.dot_dimension_numbers<[1], [0], [0], [1], [0, 0, 1, 1], [], []>} : vector<2x96xbf16>, vector<96x32xbf16>, vector<2x32xf32> -> vector<2x32xf32>
    %402 = vector.broadcast %15 : vector<1x32xf32> to vector<2x32xf32>
    %403 = arith.addf %401, %402 : vector<2x32xf32>
    %cst_61 = arith.constant 0.000000e+00 : f32
    %404 = vector.broadcast %cst_61 : f32 to vector<2x32xf32>
    %405 = arith.maximumf %403, %404 : vector<2x32xf32>
    %406 = arith.truncf %405 : vector<2x32xf32> to vector<2x32xbf16>
    %cst_62 = arith.constant dense<0.000000e+00> : vector<2x32xf32>
    %407 = tpu.matmul %406, %5, %cst_62 {dimension_numbers = #tpu.dot_dimension_numbers<[1], [0], [0], [1], [0, 0, 1, 1], [], []>} : vector<2x32xbf16>, vector<32x32xbf16>, vector<2x32xf32> -> vector<2x32xf32>
    %408 = vector.extract_strided_slice %407 {offsets = [0, 0], sizes = [2, 4], strides = [1, 1]} : vector<2x32xf32> to vector<2x4xf32>
    %409 = vector.broadcast %16 : vector<1x4xf32> to vector<2x4xf32>
    %410 = arith.addf %408, %409 : vector<2x4xf32>
    %c0_63 = arith.constant 0 : index
    %c0_64 = arith.constant 0 : index
    %411 = vector.load %arg4[%c0_63, %c0_64] : memref<2x4xf32, #tpu.memory_space<vmem>>, vector<2x4xf32>
    tpu.vector_store %arg4[%c0_63, %c0_64], %410 {strides = array<i32>} : memref<2x4xf32, #tpu.memory_space<vmem>>, vector<2x4xf32>,
    return
  }
}

</mosaic_0001>

<bundles_post_ra>
// kernel: forward.1
= control target key start
LH: loop header
LB: loop body
LE: loop exit
PB: predicated region body
PF: predicated region fallthrough
CT: control target
= control target key end

     0   :  { %v1726_v2 = vmov 0   ;;  %s1727_s25 = smov 64   ;;  %s2164_s0 = inlined_call_operand.vmem [shape: s32[64,1], index: 0, kind: input, shape index: {}]   ;;  %s2165_s1 = inlined_call_operand.vmem [shape: bf16[160,96], index: 1, kind: input, shape index: {}]   ;;  %s2166_s2 = inlined_call_operand.vmem [shape: bf16[128,32], index: 2, kind: input, shape index: {}]   ;;  %s2167_s3 = inlined_call_operand.vmem [shape: f32[8,128], index: 3, kind: input, shape index: {}]   ;;  %s2168_s4 = inlined_call_operand.hbm [shape: f32[2,4], index: 4, kind: output, shape index: {}]  }
   0x1   :  { %v63_v0 = vld [vmem:[%s2164_s0] sm:$0xff]  ;;  %v1763_v1 = vld [vmem:[%s2165_s1 + $0x28] sm:$0xff]  ;;  %1593 = vset.pattern.permute.xlu0 %v1726_v2  ;;  %1594 = vset.pattern.permute.xlu1 %v1726_v2  ;;  %v1572_v5 = vld [vmem:[%s2165_s1 + $0x18] sm:$0xff] }
   0x2   :  { %v1769_v3 = vld [vmem:[%s2165_s1 + $0x20] sm:$0xff]  ;;  %74 = vperm.xlu0 %1593, %v63_v0   ;;  %205 = vmatpush.bf16.msra.mxu3 %v1763_v1 }
   0x3   :  { %v1596_v4 = vld [vmem:[%s2167_s3 + $0x1] ss:$0 sm:$0xff]  ;;  %369 = vmatpush.bf16.msra.mxu1 %v1763_v1 }
   0x4   :  { %233 = vrot.lane.b32.xlu1 %v1596_v4, %s1727_s25 }
   0x5   :  { %9 = vsyncpa [#allocation3], 0  ;;  %158 = vmatpush.bf16.msra.mxu0 %v1572_v5  ;;  %1595 = vset.pattern.permute.xlu2 %v1726_v2  ;;  %v64_v6 = vld [vmem:[%s2164_s0 + $0x8] sm:$0xff]  ;;  %v1571_v7 = vld [vmem:[%s2165_s1 + $0x10] sm:$0xff]  ;;  %v71_v10 = vlaneseq  ;;  %v1728_v14 = vmov 0.0   ;;  %vm141_vm2 = vcmask 523264  }
   0x6   :  { %206 = vmatpush.bf16.msra.mxu3 %v1769_v3  ;;  %v1570_v8 = vld [vmem:[%s2165_s1 + $0x8] sm:$0xff]  ;;  %v1569_v9 = vld [vmem:[%s2165_s1] sm:$0xff]  ;;  %s1729_s8 = smov 96   ;;  %s1730_s9 = smov 32   ;;  %v1826_v47 = vld [vmem:[%s2165_s1 + $0x38] sm:$0xff]  ;;  %vm195_vm7 = vcmask 261120  }
   0x7   :  { %370 = vmatpush.bf16.msra.mxu1 %v1769_v3  ;;  %v1801_v12 = vand.u32 127, %v71_v10  ;;  %v1818_v45 = vld [vmem:[%s2165_s1 + $0x48] sm:$0xff]  ;;  %v1597_v46 = vld [vmem:[%s2167_s3 + $0x2] ss:$0 sm:$0xff]  ;;  %284 = vmatpush.bf16.msra.mxu2 %v1826_v47  ;;  %v1839_v49 = vld [vmem:[%s2165_s1 + $0x30] sm:$0xff]  ;;  %s1731_s6 = smov [#allocation2]  }
   0x8   :  { %v1832_v48 = vld [vmem:[%s2165_s1 + $0x40] sm:$0xff]  ;;  %s1442_s7 = sshll.u32 %s1731_s6, 4  ;;  %s1444_s11 = sshll.u32 %s2168_s4, 4  ;;  %s1443_s7 = int_to_ptr.vmem [resolvable:$true] %s1442_s7  ;;  %s1445_s11 = int_to_ptr.hbm [resolvable:$true] %s1444_s11 }
   0x9   :  { %207 = vmatmul.bf16.vlgmr.msra.gmra.mxu3 %v1726_v2  ;;  %159 = vmatpush.bf16.msra.mxu0 %v1571_v7  ;;  %v1872_v60 = vld [vmem:[%s2167_s3] ss:$0 sm:$0xff] }
   0xa   :  { %77 = vperm.xlu0 %1593, %v64_v6   ;;  %309 = vmatpush.bf16.msrb.mxu3 %v1818_v45 }
   0xb   :  { %508 = vmatpush.bf16.msrb.mxu1 %v1763_v1  ;;  %285 = vmatpush.bf16.msra.mxu2 %v1839_v49 }
   0xd   :  { %160 = vmatpush.bf16.msra.mxu0 %v1570_v8 }
   0xe   :  { %310 = vmatpush.bf16.msrb.mxu3 %v1832_v48 }
   0xf   :  { %509 = vmatpush.bf16.msrb.mxu1 %v1769_v3  ;;  %432 = vmatpush.bf16.msrb.mxu2 %v1826_v47 }
  0x11   :  { %161 = vmatpush.bf16.msra.mxu0 %v1569_v9 }
  0x12   :  { %452 = vmatpush.bf16.msra.mxu3 %v1818_v45 }
  0x13   :  { %433 = vmatpush.bf16.msrb.mxu2 %v1839_v49 }
  0x15   :  { %925 = vmatpush.bf16.msrb.mxu0 %v1763_v1 }
  0x16   :  { %453 = vmatpush.bf16.msra.mxu3 %v1832_v48 }
  0x19   :  { %926 = vmatpush.bf16.msrb.mxu0 %v1769_v3  ;;  %311 = vmatmul.bf16.vlgmr.msrb.gmra.mxu3 %v1726_v2 }
  0x1a   :  { %591 = vmatpush.bf16.msrb.mxu3 %v1818_v45 }
  0x1e   :  { %592 = vmatpush.bf16.msrb.mxu3 %v1832_v48 }
  0x74   :  { %v75_v11 = vpop.permute.xlu0 %74 }
  0x75   :  { %vm97_vm0 = vcmp.eq.s32.totalorder %v1801_v12, %v75_v11 }
  0x76   :  { %v105_v15 = vsel %vm97_vm0, 1.0, %v1728_v14  ;;  %v1808_v18 = vpop.permute.xlu1 %233 }
  0x7c   :  { %v78_v13 = vpop.permute.xlu0 %77 }
  0x7d   :  { %vm98_vm1 = vcmp.eq.s32.totalorder %v1801_v12, %v78_v13 }
  0x7e   :  { %v106_v16 = vsel %vm98_vm1, 1.0, %v1728_v14 }
  0x7f   :  { %v113_v17 = vpack.c.bf16 %v106_v16, %v105_v15 }
  0x81   :  { %1469 = vmatmul.msk.bf16.vlgmr.msra.gmra.mxu0 %vm141_vm2, %v113_v17 }
  0x82   :  { %1127 = vmatpush.bf16.msra.mxu0 %v1826_v47 }
  0x86   :  { %1128 = vmatpush.bf16.msra.mxu0 %v1839_v49 }
  0x8c   :  { %v208_v19 = vpop.f32.mrf.mxu3 }
  0x8d   :  { %v236_v20 = vadd.f32 %v1808_v18, %v208_v19 }
  0x8f   :  { %238 = vrot.lane.b32.xlu1 %v236_v20, %s1727_s25 }
  0x94   :  { %v210_v21 = vpop.f32.mrf.mxu3 }
  0x9c   :  { %v312_v54 = vpop.f32.mrf.mxu3 }
  0xa4   :  { %v314_v57 = vpop.f32.mrf.mxu3 }
  0xfe   :  { %v163_v22 = vpop.f32.mrf.mxu0 }
  0xff   :  { %v212_v23 = vadd.f32 %v208_v19, %v163_v22 }
 0x101   :  { %v1481_v24 = vmul.f32 -1.442695, %v212_v23  ;;  %v239_v34 = vpop.permute.xlu1 %238 }
 0x103   :  { %1601 = vpow2.f32 %v1481_v24 }
 0x109   :  { %v1602_v25 = vpop.eup %1601 }
 0x10a   :  { %v216_v26 = vadd.f32 1.0, %v1602_v25 }
 0x10c   :  { %1603 = vrcp.f32 %v216_v26  ;;  %v228_v30 = vand.u32 2147483648, %v216_v26  ;;  %v226_v32 = vand.u32 2147483647, %v216_v26  ;;  %vm222_vm4 = vweird.f32 %v216_v26 }
 0x10e   :  { %v229_v35 = vor.u32 1.1754944e-38, %v228_v30  ;;  %vm227_vm6 = vcmp.eq.f32.partialorder %v226_v32, 8.507059e+37 }
 0x112   :  { %v1604_v27 = vpop.eup %1603 }
 0x113   :  { %v218_v28 = vmul.f32 %v1604_v27, %v216_v26  ;;  %vm223_vm3 = vweird.f32 %v1604_v27 }
 0x114   :  { %vm224_vm5 = vmor %vm222_vm4, %vm223_vm3 }
 0x115   :  { %v219_v29 = vsub.f32 1.0, %v218_v28 }
 0x117   :  { %v220_v31 = vmul.f32 %v1604_v27, %v219_v29 }
 0x119   :  { %v221_v33 = vadd.f32 %v1604_v27, %v220_v31 }
 0x11b   :  { %v225_v36 = vsel %vm224_vm5, %v1604_v27, %v221_v33 }
 0x11c   :  { %v230_v37 = vsel %vm227_vm6, %v229_v35, %v225_v36 }
 0x11d   :  { %v241_v38 = vmul.f32 %v239_v34, %v230_v37 }
 0x11f   :  { %243 = vrot.lane.b32.xlu2 %v241_v38, %s1727_s25 }
 0x179   :  { %v244_v39 = vpop.permute.xlu2 %243 }
 0x17a   :  { %v246_v40 = vadd.f32 %v244_v39, %v163_v22  ;;  %v165_v22 = vpop.f32.mrf.mxu0 }
 0x17c   :  { %1605 = vtanh.f32 %v246_v40 }
 0x182   :  { %v1606_v41 = vpop.eup %1605 }
 0x183   :  { %v248_v42 = vsub.f32 0.0, %v1606_v41 }
 0x185   :  { %250 = vrot.lane.b32.xlu2 %v248_v42, %s1729_s8 }
 0x18d   :  { %337 = vrot.lane.b32.xlu2 %v1597_v46, %s1727_s25 }
 0x1df   :  { %v251_v43 = vpop.permute.xlu2 %250 }
 0x1e0   :  { %v253_v44 = vmul.f32 %v251_v43, %v230_v37 }
 0x1e2   :  { %255 = vrot.lane.b32.xlu0 %v253_v44, %s1730_s9 }
 0x1e7   :  { %v1857_v53 = vpop.permute.xlu2 %337 }
 0x1e8   :  { %v340_v55 = vadd.f32 %v1857_v53, %v312_v54 }
 0x1ea   :  { %342 = vrot.lane.b32.xlu0 %v340_v55, %s1727_s25 }
 0x254   :  { %v256_v50 = vpop.permute.xlu0 %255 }
 0x255   :  { %v1852_v51 = vadd.f32 %v1606_v41, %v256_v50 }
 0x257   :  { %v259_v52 = vpack.c.bf16 %v1852_v51, %v1852_v51 }
 0x259   :  { %261 = vrot.lane.b32.xlu1 %v259_v52, %s1727_s25 }
 0x25c   :  { %v343_v17 = vpop.permute.xlu0 %342 }
 0x2cb   :  { %v262_v56 = vpop.permute.xlu1 %261 }
 0x2cc   :  { %1490 = vmatmul.msk.bf16.vlgmr.msra.gmra.mxu2 %vm195_vm7, %v262_v56  ;;  %1500 = vmatmul.msk.bf16.vlgmr.msra.gmra.mxu1 %vm195_vm7, %v262_v56 }
 0x2cd   :  { %647 = vmatpush.bf16.msra.mxu1 %v1763_v1  ;;  %571 = vmatpush.bf16.msra.mxu2 %v1826_v47 }
 0x2d1   :  { %648 = vmatpush.bf16.msra.mxu1 %v1769_v3  ;;  %572 = vmatpush.bf16.msra.mxu2 %v1839_v49 }
 0x349   :  { %v372_v58 = vpop.f32.mrf.mxu1 }
 0x34a   :  { %v396_v59 = vadd.f32 %v372_v58, %v1808_v18  ;;  %v376_v23 = vadd.f32 %v372_v58, %v165_v22 }
 0x34c   :  { %398 = vrot.lane.b32.xlu1 %v396_v59, %s1727_s25  ;;  %v1501_v24 = vmul.f32 -1.442695, %v376_v23 }
 0x34f   :  { %v287_v61 = vpop.f32.mrf.mxu2 }
 0x350   :  { %v288_v62 = vadd.f32 %v1872_v60, %v287_v61  ;;  %v66_v61 = vld [vmem:[%s2164_s0 + $0x18] sm:$0xff] }
 0x351   :  { %v374_v63 = vpop.f32.mrf.mxu1 }
 0x352   :  { %v316_v0 = vadd.f32 %v312_v54, %v288_v62 }
 0x354   :  { %v1499_v2 = vmul.f32 -1.442695, %v316_v0 }
 0x356   :  { %1607 = vpow2.f32 %v1499_v2 }
 0x357   :  { %v289_v4 = vpop.f32.mrf.mxu2 }
 0x35c   :  { %v1608_v5 = vpop.eup %1607 }
 0x35d   :  { %v320_v6 = vadd.f32 1.0, %v1608_v5 }
 0x35f   :  { %1609 = vrcp.f32 %v320_v6  ;;  %v332_v10 = vand.u32 2147483648, %v320_v6  ;;  %v330_v13 = vand.u32 2147483647, %v320_v6  ;;  %vm326_vm9 = vweird.f32 %v320_v6 }
 0x360   :  { %1611 = vpow2.f32 %v1501_v24 }
 0x361   :  { %v333_v16 = vor.u32 1.1754944e-38, %v332_v10  ;;  %vm331_vm11 = vcmp.eq.f32.partialorder %v330_v13, 8.507059e+37 }
 0x365   :  { %v1610_v7 = vpop.eup %1609 }
 0x366   :  { %v322_v8 = vmul.f32 %v1610_v7, %v320_v6  ;;  %vm327_vm8 = vweird.f32 %v1610_v7  ;;  %v1612_v25 = vpop.eup %1611 }
 0x367   :  { %vm328_vm10 = vmor %vm326_vm9, %vm327_vm8  ;;  %v380_v26 = vadd.f32 1.0, %v1612_v25 }
 0x368   :  { %v323_v9 = vsub.f32 1.0, %v322_v8 }
 0x369   :  { %1613 = vrcp.f32 %v380_v26  ;;  %v392_v32 = vand.u32 2147483648, %v380_v26  ;;  %vm386_vm13 = vweird.f32 %v380_v26  ;;  %v390_v33 = vand.u32 2147483647, %v380_v26 }
 0x36a   :  { %v324_v11 = vmul.f32 %v1610_v7, %v323_v9 }
 0x36b   :  { %v393_v35 = vor.u32 1.1754944e-38, %v392_v32  ;;  %vm391_vm15 = vcmp.eq.f32.partialorder %v390_v33, 8.507059e+37 }
 0x36c   :  { %v325_v15 = vadd.f32 %v1610_v7, %v324_v11 }
 0x36e   :  { %v329_v19 = vsel %vm328_vm10, %v1610_v7, %v325_v15 }
 0x36f   :  { %v334_v20 = vsel %vm331_vm11, %v333_v16, %v329_v19  ;;  %v1614_v27 = vpop.eup %1613 }
 0x370   :  { %v345_v21 = vmul.f32 %v343_v17, %v334_v20  ;;  %v382_v28 = vmul.f32 %v1614_v27, %v380_v26  ;;  %vm387_vm12 = vweird.f32 %v1614_v27 }
 0x371   :  { %vm388_vm14 = vmor %vm386_vm13, %vm387_vm12 }
 0x372   :  { %347 = vrot.lane.b32.xlu2 %v345_v21, %s1727_s25  ;;  %v383_v29 = vsub.f32 1.0, %v382_v28 }
 0x374   :  { %v384_v30 = vmul.f32 %v1614_v27, %v383_v29 }
 0x376   :  { %v385_v31 = vadd.f32 %v1614_v27, %v384_v30 }
 0x378   :  { %v389_v34 = vsel %vm388_vm14, %v1614_v27, %v385_v31 }
 0x379   :  { %v394_v37 = vsel %vm391_vm15, %v393_v35, %v389_v34 }
 0x3be   :  { %v399_v36 = vpop.permute.xlu1 %398 }
 0x3bf   :  { %v401_v38 = vmul.f32 %v399_v36, %v394_v37 }
 0x3c1   :  { %403 = vrot.lane.b32.xlu0 %v401_v38, %s1727_s25 }
 0x3cc   :  { %v348_v39 = vpop.permute.xlu2 %347 }
 0x3cd   :  { %v350_v40 = vadd.f32 %v348_v39, %v288_v62 }
 0x3cf   :  { %1615 = vtanh.f32 %v350_v40 }
 0x3d5   :  { %v1616_v41 = vpop.eup %1615 }
 0x3d6   :  { %v352_v42 = vsub.f32 0.0, %v1616_v41 }
 0x3d8   :  { %354 = vrot.lane.b32.xlu1 %v352_v42, %s1729_s8 }
 0x433   :  { %v404_v43 = vpop.permute.xlu0 %403 }
 0x434   :  { %v406_v44 = vadd.f32 %v404_v43, %v165_v22 }
 0x436   :  { %1617 = vtanh.f32 %v406_v44 }
 0x43c   :  { %v1618_v46 = vpop.eup %1617 }
 0x43d   :  { %v408_v50 = vsub.f32 %v1852_v51, %v1618_v46  ;;  %v65_v51 = vld [vmem:[%s2164_s0 + $0x10] sm:$0xff] }
 0x43f   :  { %410 = vrot.lane.b32.xlu2 %v408_v50, %s1729_s8 }
 0x44a   :  { %v355_v52 = vpop.permute.xlu1 %354 }
 0x44b   :  { %v357_v54 = vmul.f32 %v355_v52, %v334_v20 }
 0x44d   :  { %359 = vrot.lane.b32.xlu0 %v357_v54, %s1730_s9 }
 0x499   :  { %v411_v55 = vpop.permute.xlu2 %410 }
 0x49a   :  { %v413_v56 = vmul.f32 %v411_v55, %v394_v37 }
 0x49c   :  { %415 = vrot.lane.b32.xlu1 %v413_v56, %s1730_s9 }
 0x4a4   :  { %80 = vperm.xlu1 %1594, %v65_v51  }
 0x4bf   :  { %v360_v57 = vpop.permute.xlu0 %359 }
 0x4c0   :  { %v1882_v58 = vadd.f32 %v1616_v41, %v360_v57 }
 0x4c2   :  { %v439_v59 = vpack.c.bf16 %v1882_v58, %v1882_v58 }
 0x4c4   :  { %441 = vrot.lane.b32.xlu2 %v439_v59, %s1727_s25 }
 0x4cc   :  { %83 = vperm.xlu2 %1595, %v66_v61  }
 0x50e   :  { %v416_v62 = vpop.permute.xlu1 %415 }
 0x50f   :  { %v1893_v63 = vadd.f32 %v1618_v46, %v416_v62 }
 0x511   :  { %v419_v0 = vpack.c.bf16 %v1893_v63, %v1893_v63 }
 0x513   :  { %421 = vrot.lane.b32.xlu0 %v419_v0, %s1727_s25 }
 0x516   :  { %v81_v5 = vpop.permute.xlu1 %80 }
 0x517   :  { %vm99_vm1 = vcmp.eq.s32.totalorder %v1801_v12, %v81_v5 }
 0x518   :  { %v107_v7 = vsel %vm99_vm1, 1.0, %v1728_v14 }
 0x51e   :  { %v442_v2 = vpop.permute.xlu2 %441 }
 0x51f   :  { %1503 = vmatmul.msk.bf16.vlgmr.msra.gmra.mxu3 %vm195_vm7, %v442_v2 }
 0x520   :  { %730 = vmatpush.bf16.msra.mxu3 %v1818_v45 }
 0x524   :  { %731 = vmatpush.bf16.msra.mxu3 %v1832_v48 }
 0x526   :  { %v84_v4 = vpop.permute.xlu2 %83 }
 0x527   :  { %vm100_vm0 = vcmp.eq.s32.totalorder %v1801_v12, %v84_v4 }
 0x528   :  { %v108_v6 = vsel %vm100_vm0, 1.0, %v1728_v14 }
 0x529   :  { %v114_v8 = vpack.c.bf16 %v108_v6, %v107_v7 }
 0x52b   :  { %1470 = vmatmul.msk.bf16.gmra.mxu0 %vm141_vm2, %v114_v8 }
 0x585   :  { %v422_v9 = vpop.permute.xlu0 %421 }
 0x586   :  { %1502 = vmatmul.msk.bf16.vlgmr.msrb.gmra.mxu2 %vm195_vm7, %v422_v9  ;;  %1505 = vmatmul.msk.bf16.vlgmr.msrb.gmra.mxu1 %vm195_vm7, %v422_v9 }
 0x587   :  { %786 = vmatpush.bf16.msrb.mxu1 %v1763_v1  ;;  %710 = vmatpush.bf16.msrb.mxu2 %v1826_v47 }
 0x58b   :  { %787 = vmatpush.bf16.msrb.mxu1 %v1769_v3  ;;  %711 = vmatpush.bf16.msrb.mxu2 %v1839_v49 }
 0x5a2   :  { %v455_v10 = vpop.f32.mrf.mxu3 }
 0x5a3   :  { %v479_v11 = vadd.f32 %v455_v10, %v1857_v53 }
 0x5a5   :  { %481 = vrot.lane.b32.xlu0 %v479_v11, %s1727_s25 }
 0x5a8   :  { %v168_v38 = vpop.f32.mrf.mxu0 }
 0x5aa   :  { %v457_v13 = vpop.f32.mrf.mxu3 }
 0x603   :  { %v511_v15 = vpop.f32.mrf.mxu1 }
 0x604   :  { %v535_v16 = vadd.f32 %v511_v15, %v1808_v18  ;;  %v515_v39 = vadd.f32 %v511_v15, %v168_v38 }
 0x606   :  { %537 = vrot.lane.b32.xlu1 %v535_v16, %s1727_s25  ;;  %v1506_v40 = vmul.f32 -1.442695, %v515_v39 }
 0x609   :  { %v435_v17 = vpop.f32.mrf.mxu2 }
 0x60a   :  { %v436_v19 = vadd.f32 %v1872_v60, %v435_v17 }
 0x60b   :  { %v513_v20 = vpop.f32.mrf.mxu1 }
 0x60c   :  { %v459_v21 = vadd.f32 %v455_v10, %v436_v19 }
 0x60e   :  { %v1504_v22 = vmul.f32 -1.442695, %v459_v21 }
 0x610   :  { %1619 = vpow2.f32 %v1504_v22 }
 0x611   :  { %v437_v23 = vpop.f32.mrf.mxu2 }
 0x616   :  { %v1620_v24 = vpop.eup %1619 }
 0x617   :  { %v463_v25 = vadd.f32 1.0, %v1620_v24  ;;  %v482_v36 = vpop.permute.xlu0 %481 }
 0x619   :  { %1621 = vrcp.f32 %v463_v25  ;;  %v475_v29 = vand.u32 2147483648, %v463_v25  ;;  %v473_v31 = vand.u32 2147483647, %v463_v25  ;;  %vm469_vm4 = vweird.f32 %v463_v25 }
 0x61a   :  { %1623 = vpow2.f32 %v1506_v40 }
 0x61b   :  { %v476_v33 = vor.u32 1.1754944e-38, %v475_v29  ;;  %vm474_vm6 = vcmp.eq.f32.partialorder %v473_v31, 8.507059e+37 }
 0x61f   :  { %v1622_v26 = vpop.eup %1621 }
 0x620   :  { %v465_v27 = vmul.f32 %v1622_v26, %v463_v25  ;;  %vm470_vm3 = vweird.f32 %v1622_v26  ;;  %v1624_v41 = vpop.eup %1623 }
 0x621   :  { %vm471_vm5 = vmor %vm469_vm4, %vm470_vm3  ;;  %v519_v42 = vadd.f32 1.0, %v1624_v41 }
 0x622   :  { %v466_v28 = vsub.f32 1.0, %v465_v27 }
 0x623   :  { %1625 = vrcp.f32 %v519_v42  ;;  %v531_v54 = vand.u32 2147483648, %v519_v42  ;;  %vm525_vm9 = vweird.f32 %v519_v42  ;;  %v529_v55 = vand.u32 2147483647, %v519_v42 }
 0x624   :  { %v467_v30 = vmul.f32 %v1622_v26, %v466_v28 }
 0x625   :  { %v532_v57 = vor.u32 1.1754944e-38, %v531_v54  ;;  %vm530_vm11 = vcmp.eq.f32.partialorder %v529_v55, 8.507059e+37 }
 0x626   :  { %v468_v32 = vadd.f32 %v1622_v26, %v467_v30 }
 0x628   :  { %v472_v34 = vsel %vm471_vm5, %v1622_v26, %v468_v32 }
 0x629   :  { %v477_v35 = vsel %vm474_vm6, %v476_v33, %v472_v34  ;;  %v1626_v43 = vpop.eup %1625 }
 0x62a   :  { %v484_v37 = vmul.f32 %v482_v36, %v477_v35  ;;  %v521_v44 = vmul.f32 %v1626_v43, %v519_v42  ;;  %vm526_vm8 = vweird.f32 %v1626_v43 }
 0x62b   :  { %vm527_vm10 = vmor %vm525_vm9, %vm526_vm8 }
 0x62c   :  { %486 = vrot.lane.b32.xlu2 %v484_v37, %s1727_s25  ;;  %v522_v46 = vsub.f32 1.0, %v521_v44 }
 0x62e   :  { %v523_v50 = vmul.f32 %v1626_v43, %v522_v46 }
 0x630   :  { %v524_v52 = vadd.f32 %v1626_v43, %v523_v50 }
 0x632   :  { %v528_v56 = vsel %vm527_vm10, %v1626_v43, %v524_v52  ;;  %v170_v52 = vpop.f32.mrf.mxu0 }
 0x633   :  { %v533_v51 = vsel %vm530_vm11, %v532_v57, %v528_v56 }
 0x678   :  { %v538_v59 = vpop.permute.xlu1 %537 }
 0x679   :  { %v540_v61 = vmul.f32 %v538_v59, %v533_v51 }
 0x67b   :  { %542 = vrot.lane.b32.xlu0 %v540_v61, %s1727_s25 }
 0x686   :  { %v487_v62 = vpop.permute.xlu2 %486 }
 0x687   :  { %v489_v0 = vadd.f32 %v487_v62, %v436_v19 }
 0x689   :  { %1627 = vtanh.f32 %v489_v0 }
 0x68f   :  { %v1628_v2 = vpop.eup %1627 }
 0x690   :  { %v491_v4 = vsub.f32 %v1882_v58, %v1628_v2 }
 0x692   :  { %493 = vrot.lane.b32.xlu1 %v491_v4, %s1729_s8 }
 0x6ed   :  { %v543_v5 = vpop.permute.xlu0 %542 }
 0x6ee   :  { %v545_v6 = vadd.f32 %v543_v5, %v168_v38 }
 0x6f0   :  { %1629 = vtanh.f32 %v545_v6 }
 0x6f6   :  { %v1630_v7 = vpop.eup %1629 }
 0x6f7   :  { %v547_v8 = vsub.f32 %v1893_v63, %v1630_v7 }
 0x6f9   :  { %549 = vrot.lane.b32.xlu2 %v547_v8, %s1729_s8 }
 0x704   :  { %v494_v9 = vpop.permute.xlu1 %493 }
 0x705   :  { %v496_v10 = vmul.f32 %v494_v9, %v477_v35 }
 0x707   :  { %498 = vrot.lane.b32.xlu0 %v496_v10, %s1730_s9 }
 0x753   :  { %v550_v11 = vpop.permute.xlu2 %549 }
 0x754   :  { %v552_v13 = vmul.f32 %v550_v11, %v533_v51 }
 0x756   :  { %554 = vrot.lane.b32.xlu1 %v552_v13, %s1730_s9 }
 0x779   :  { %v499_v15 = vpop.permute.xlu0 %498 }
 0x77a   :  { %v1925_v58 = vadd.f32 %v1628_v2, %v499_v15 }
 0x77c   :  { %v578_v16 = vpack.c.bf16 %v1925_v58, %v1925_v58 }
 0x77e   :  { %580 = vrot.lane.b32.xlu2 %v578_v16, %s1727_s25 }
 0x7c8   :  { %v555_v17 = vpop.permute.xlu1 %554 }
 0x7c9   :  { %v1930_v63 = vadd.f32 %v1630_v7, %v555_v17 }
 0x7cb   :  { %v558_v19 = vpack.c.bf16 %v1930_v63, %v1930_v63 }
 0x7cd   :  { %560 = vrot.lane.b32.xlu0 %v558_v19, %s1727_s25 }
 0x7d8   :  { %v581_v20 = vpop.permute.xlu2 %580 }
 0x7d9   :  { %1508 = vmatmul.msk.bf16.vlgmr.msrb.gmra.mxu3 %vm195_vm7, %v581_v20 }
 0x7da   :  { %869 = vmatpush.bf16.msrb.mxu3 %v1818_v45 }
 0x7de   :  { %870 = vmatpush.bf16.msrb.mxu3 %v1832_v48 }
 0x83f   :  { %v561_v21 = vpop.permute.xlu0 %560 }
 0x840   :  { %1507 = vmatmul.msk.bf16.vlgmr.msra.gmra.mxu2 %vm195_vm7, %v561_v21  ;;  %1510 = vmatmul.msk.bf16.vlgmr.msra.gmra.mxu1 %vm195_vm7, %v561_v21 }
 0x841   :  { %849 = vmatpush.bf16.msra.mxu2 %v1826_v47  ;;  %988 = vmatpush.bf16.msra.mxu1 %v1826_v47 }
 0x845   :  { %850 = vmatpush.bf16.msra.mxu2 %v1839_v49  ;;  %989 = vmatpush.bf16.msra.mxu1 %v1839_v49 }
 0x85c   :  { %v594_v22 = vpop.f32.mrf.mxu3 }
 0x85d   :  { %v618_v23 = vadd.f32 %v594_v22, %v1857_v53 }
 0x85f   :  { %620 = vrot.lane.b32.xlu1 %v618_v23, %s1727_s25 }
 0x864   :  { %v596_v24 = vpop.f32.mrf.mxu3 }
 0x8bd   :  { %v650_v25 = vpop.f32.mrf.mxu1 }
 0x8be   :  { %v674_v26 = vadd.f32 %v650_v25, %v1808_v18  ;;  %v654_v54 = vadd.f32 %v650_v25, %v170_v52 }
 0x8c0   :  { %676 = vrot.lane.b32.xlu2 %v674_v26, %s1727_s25  ;;  %v1511_v55 = vmul.f32 -1.442695, %v654_v54 }
 0x8c3   :  { %v574_v27 = vpop.f32.mrf.mxu2 }
 0x8c4   :  { %v575_v28 = vadd.f32 %v1872_v60, %v574_v27  ;;  %v68_v27 = vld [vmem:[%s2164_s0 + $0x28] sm:$0xff] }
 0x8c5   :  { %v652_v29 = vpop.f32.mrf.mxu1 }
 0x8c6   :  { %v598_v30 = vadd.f32 %v594_v22, %v575_v28 }
 0x8c8   :  { %v1509_v31 = vmul.f32 -1.442695, %v598_v30 }
 0x8ca   :  { %1631 = vpow2.f32 %v1509_v31 }
 0x8cb   :  { %v576_v32 = vpop.f32.mrf.mxu2 }
 0x8d0   :  { %v1632_v33 = vpop.eup %1631 }
 0x8d1   :  { %v602_v34 = vadd.f32 1.0, %v1632_v33  ;;  %v621_v44 = vpop.permute.xlu1 %620 }
 0x8d3   :  { %1633 = vrcp.f32 %v602_v34  ;;  %v614_v38 = vand.u32 2147483648, %v602_v34  ;;  %v612_v40 = vand.u32 2147483647, %v602_v34  ;;  %vm608_vm13 = vweird.f32 %v602_v34 }
 0x8d4   :  { %1635 = vpow2.f32 %v1511_v55 }
 0x8d5   :  { %v615_v42 = vor.u32 1.1754944e-38, %v614_v38  ;;  %vm613_vm15 = vcmp.eq.f32.partialorder %v612_v40, 8.507059e+37 }
 0x8d9   :  { %v1634_v35 = vpop.eup %1633 }
 0x8da   :  { %v604_v36 = vmul.f32 %v1634_v35, %v602_v34  ;;  %vm609_vm12 = vweird.f32 %v1634_v35  ;;  %v1636_v56 = vpop.eup %1635 }
 0x8db   :  { %vm610_vm14 = vmor %vm608_vm13, %vm609_vm12  ;;  %v658_v57 = vadd.f32 1.0, %v1636_v56 }
 0x8dc   :  { %v605_v37 = vsub.f32 1.0, %v604_v36 }
 0x8dd   :  { %1637 = vrcp.f32 %v658_v57  ;;  %v670_v2 = vand.u32 2147483648, %v658_v57  ;;  %vm664_vm1 = vweird.f32 %v658_v57  ;;  %v668_v4 = vand.u32 2147483647, %v658_v57 }
 0x8de   :  { %v606_v39 = vmul.f32 %v1634_v35, %v605_v37 }
 0x8df   :  { %v671_v6 = vor.u32 1.1754944e-38, %v670_v2  ;;  %vm669_vm4 = vcmp.eq.f32.partialorder %v668_v4, 8.507059e+37 }
 0x8e0   :  { %v607_v41 = vadd.f32 %v1634_v35, %v606_v39 }
 0x8e2   :  { %v611_v43 = vsel %vm610_vm14, %v1634_v35, %v607_v41 }
 0x8e3   :  { %v616_v46 = vsel %vm613_vm15, %v615_v42, %v611_v43  ;;  %v1638_v59 = vpop.eup %1637 }
 0x8e4   :  { %v623_v50 = vmul.f32 %v621_v44, %v616_v46  ;;  %v660_v51 = vmul.f32 %v1638_v59, %v658_v57  ;;  %vm665_vm0 = vweird.f32 %v1638_v59 }
 0x8e5   :  { %vm666_vm3 = vmor %vm664_vm1, %vm665_vm0 }
 0x8e6   :  { %625 = vrot.lane.b32.xlu0 %v623_v50, %s1727_s25  ;;  %v661_v61 = vsub.f32 1.0, %v660_v51 }
 0x8e8   :  { %v662_v62 = vmul.f32 %v1638_v59, %v661_v61 }
 0x8ea   :  { %v663_v0 = vadd.f32 %v1638_v59, %v662_v62 }
 0x8ec   :  { %v667_v5 = vsel %vm666_vm3, %v1638_v59, %v663_v0 }
 0x8ed   :  { %v672_v8 = vsel %vm669_vm4, %v671_v6, %v667_v5 }
 0x91a   :  { %v677_v7 = vpop.permute.xlu2 %676 }
 0x91b   :  { %v679_v9 = vmul.f32 %v677_v7, %v672_v8 }
 0x91d   :  { %681 = vrot.lane.b32.xlu1 %v679_v9, %s1727_s25 }
 0x958   :  { %v626_v10 = vpop.permute.xlu0 %625 }
 0x959   :  { %v628_v11 = vadd.f32 %v626_v10, %v575_v28 }
 0x95b   :  { %1639 = vtanh.f32 %v628_v11 }
 0x961   :  { %v1640_v13 = vpop.eup %1639 }
 0x962   :  { %v630_v15 = vsub.f32 %v1925_v58, %v1640_v13  ;;  %v67_v58 = vld [vmem:[%s2164_s0 + $0x20] sm:$0xff] }
 0x964   :  { %632 = vrot.lane.b32.xlu2 %v630_v15, %s1729_s8 }
 0x98f   :  { %v682_v16 = vpop.permute.xlu1 %681 }
 0x990   :  { %v684_v17 = vadd.f32 %v682_v16, %v170_v52 }
 0x992   :  { %1641 = vtanh.f32 %v684_v17 }
 0x998   :  { %v1642_v19 = vpop.eup %1641 }
 0x999   :  { %v686_v20 = vsub.f32 %v1930_v63, %v1642_v19 }
 0x99b   :  { %688 = vrot.lane.b32.xlu0 %v686_v20, %s1729_s8 }
 0x9be   :  { %v633_v21 = vpop.permute.xlu2 %632 }
 0x9bf   :  { %v635_v22 = vmul.f32 %v633_v21, %v616_v46 }
 0x9c1   :  { %637 = vrot.lane.b32.xlu1 %v635_v22, %s1730_s9 }
 0xa0d   :  { %v689_v23 = vpop.permute.xlu0 %688 }
 0xa0e   :  { %v691_v24 = vmul.f32 %v689_v23, %v672_v8 }
 0xa10   :  { %693 = vrot.lane.b32.xlu2 %v691_v24, %s1730_s9 }
 0xa18   :  { %86 = vperm.xlu2 %1595, %v67_v58  }
 0xa33   :  { %v638_v25 = vpop.permute.xlu1 %637 }
 0xa34   :  { %v1960_v26 = vadd.f32 %v1640_v13, %v638_v25 }
 0xa36   :  { %v717_v63 = vpack.c.bf16 %v1960_v26, %v1960_v26 }
 0xa38   :  { %719 = vrot.lane.b32.xlu0 %v717_v63, %s1727_s25 }
 0xa40   :  { %89 = vperm.xlu0 %1593, %v68_v27  }
 0xa6a   :  { %v694_v28 = vpop.permute.xlu2 %693 }
 0xa6b   :  { %v1968_v29 = vadd.f32 %v1642_v19, %v694_v28 }
 0xa6d   :  { %v697_v30 = vpack.c.bf16 %v1968_v29, %v1968_v29 }
 0xa6f   :  { %699 = vrot.lane.b32.xlu1 %v697_v30, %s1727_s25 }
 0xa72   :  { %v87_v32 = vpop.permute.xlu2 %86 }
 0xa73   :  { %vm101_vm5 = vcmp.eq.s32.totalorder %v1801_v12, %v87_v32 }
 0xa74   :  { %v109_v34 = vsel %vm101_vm5, 1.0, %v1728_v14 }
 0xaaa   :  { %v720_v31 = vpop.permute.xlu0 %719 }
 0xaab   :  { %1513 = vmatmul.msk.bf16.vlgmr.msra.gmra.mxu3 %vm195_vm7, %v720_v31 }
 0xaac   :  { %1064 = vmatpush.bf16.msra.mxu3 %v1763_v1 }
 0xab0   :  { %1065 = vmatpush.bf16.msra.mxu3 %v1769_v3 }
 0xab2   :  { %v90_v33 = vpop.permute.xlu0 %89 }
 0xab3   :  { %vm102_vm6 = vcmp.eq.s32.totalorder %v1801_v12, %v90_v33 }
 0xab4   :  { %v110_v35 = vsel %vm102_vm6, 1.0, %v1728_v14 }
 0xab5   :  { %v115_v36 = vpack.c.bf16 %v110_v35, %v109_v34  ;;  %v69_v35 = vld [vmem:[%s2164_s0 + $0x30] sm:$0xff] }
 0xab7   :  { %1471 = vmatmul.msk.bf16.gmra.mxu0 %vm141_vm2, %v115_v36 }
 0xae1   :  { %v700_v37 = vpop.permute.xlu1 %699 }
 0xae2   :  { %1512 = vmatmul.msk.bf16.vlgmr.msrb.gmra.mxu2 %vm195_vm7, %v700_v37  ;;  %1515 = vmatmul.msk.bf16.vlgmr.msrb.gmra.mxu1 %vm195_vm7, %v700_v37 }
 0xae3   :  { %1008 = vmatpush.bf16.msrb.mxu2 %v1818_v45  ;;  %1147 = vmatpush.bf16.msrb.mxu1 %v1818_v45 }
 0xae7   :  { %1009 = vmatpush.bf16.msrb.mxu2 %v1832_v48  ;;  %1148 = vmatpush.bf16.msrb.mxu1 %v1832_v48 }
 0xb2e   :  { %v733_v1 = vpop.f32.mrf.mxu3 }
 0xb2f   :  { %v757_v3 = vadd.f32 %v733_v1, %v1857_v53 }
 0xb31   :  { %759 = vrot.lane.b32.xlu1 %v757_v3, %s1727_s25 }
 0xb34   :  { %v173_v55 = vpop.f32.mrf.mxu0 }
 0xb36   :  { %v735_v38 = vpop.f32.mrf.mxu3 }
 0xb5f   :  { %v789_v39 = vpop.f32.mrf.mxu1 }
 0xb60   :  { %v813_v40 = vadd.f32 %v789_v39, %v1808_v18  ;;  %v793_v56 = vadd.f32 %v789_v39, %v173_v55 }
 0xb62   :  { %815 = vrot.lane.b32.xlu2 %v813_v40, %s1727_s25  ;;  %v1516_v59 = vmul.f32 -1.442695, %v793_v56 }
 0xb65   :  { %v713_v41 = vpop.f32.mrf.mxu2 }
 0xb66   :  { %v714_v44 = vadd.f32 %v1872_v60, %v713_v41 }
 0xb67   :  { %v791_v42 = vpop.f32.mrf.mxu1 }
 0xb68   :  { %v737_v46 = vadd.f32 %v733_v1, %v714_v44 }
 0xb6a   :  { %v1514_v50 = vmul.f32 -1.442695, %v737_v46 }
 0xb6c   :  { %1643 = vpow2.f32 %v1514_v50 }
 0xb6d   :  { %v715_v43 = vpop.f32.mrf.mxu2 }
 0xb72   :  { %v1644_v52 = vpop.eup %1643 }
 0xb73   :  { %v741_v54 = vadd.f32 1.0, %v1644_v52 }
 0xb75   :  { %1645 = vrcp.f32 %v741_v54  ;;  %v753_v5 = vand.u32 2147483648, %v741_v54  ;;  %vm747_vm9 = vweird.f32 %v741_v54  ;;  %v751_v6 = vand.u32 2147483647, %v741_v54 }
 0xb76   :  { %1647 = vpow2.f32 %v1516_v59 }
 0xb77   :  { %v754_v8 = vor.u32 1.1754944e-38, %v753_v5  ;;  %vm752_vm11 = vcmp.eq.f32.partialorder %v751_v6, 8.507059e+37 }
 0xb7b   :  { %v1646_v57 = vpop.eup %1645 }
 0xb7c   :  { %v743_v51 = vmul.f32 %v1646_v57, %v741_v54  ;;  %v1648_v0 = vpop.eup %1647  ;;  %vm748_vm8 = vweird.f32 %v1646_v57 }
 0xb7d   :  { %v797_v2 = vadd.f32 1.0, %v1648_v0  ;;  %vm749_vm10 = vmor %vm747_vm9, %vm748_vm8 }
 0xb7e   :  { %v744_v61 = vsub.f32 1.0, %v743_v51 }
 0xb7f   :  { %1649 = vrcp.f32 %v797_v2  ;;  %v809_v20 = vand.u32 2147483648, %v797_v2  ;;  %vm803_vm13 = vweird.f32 %v797_v2  ;;  %v807_v21 = vand.u32 2147483647, %v797_v2 }
 0xb80   :  { %v745_v62 = vmul.f32 %v1646_v57, %v744_v61 }
 0xb81   :  { %v810_v23 = vor.u32 1.1754944e-38, %v809_v20  ;;  %vm808_vm15 = vcmp.eq.f32.partialorder %v807_v21, 8.507059e+37 }
 0xb82   :  { %v746_v4 = vadd.f32 %v1646_v57, %v745_v62 }
 0xb84   :  { %v750_v7 = vsel %vm749_vm10, %v1646_v57, %v746_v4  ;;  %v2036_v57 = vpop.f32.mrf.mxu0 }
 0xb85   :  { %v755_v10 = vsel %vm752_vm11, %v754_v8, %v750_v7  ;;  %v1650_v13 = vpop.eup %1649 }
 0xb86   :  { %v799_v15 = vmul.f32 %v1650_v13, %v797_v2  ;;  %vm804_vm12 = vweird.f32 %v1650_v13 }
 0xb87   :  { %vm805_vm14 = vmor %vm803_vm13, %vm804_vm12 }
 0xb88   :  { %v800_v16 = vsub.f32 1.0, %v799_v15 }
 0xb8a   :  { %v801_v17 = vmul.f32 %v1650_v13, %v800_v16 }
 0xb8c   :  { %v802_v19 = vadd.f32 %v1650_v13, %v801_v17 }
 0xb8e   :  { %v806_v22 = vsel %vm805_vm14, %v1650_v13, %v802_v19 }
 0xb8f   :  { %v811_v58 = vsel %vm808_vm15, %v810_v23, %v806_v22 }
 0xba3   :  { %v760_v9 = vpop.permute.xlu1 %759 }
 0xba4   :  { %v762_v11 = vmul.f32 %v760_v9, %v755_v10 }
 0xba6   :  { %764 = vrot.lane.b32.xlu0 %v762_v11, %s1727_s25 }
 0xbbc   :  { %v816_v24 = vpop.permute.xlu2 %815 }
 0xbbd   :  { %v818_v25 = vmul.f32 %v816_v24, %v811_v58 }
 0xbbf   :  { %820 = vrot.lane.b32.xlu1 %v818_v25, %s1727_s25 }
 0xc18   :  { %v765_v63 = vpop.permute.xlu0 %764 }
 0xc19   :  { %v767_v27 = vadd.f32 %v765_v63, %v714_v44 }
 0xc1b   :  { %1651 = vtanh.f32 %v767_v27 }
 0xc21   :  { %v1652_v28 = vpop.eup %1651 }
 0xc22   :  { %v769_v30 = vsub.f32 %v1960_v26, %v1652_v28  ;;  %v70_v26 = vld [vmem:[%s2164_s0 + $0x38] sm:$0xff] }
 0xc24   :  { %771 = vrot.lane.b32.xlu2 %v769_v30, %s1729_s8 }
 0xc31   :  { %v821_v31 = vpop.permute.xlu1 %820 }
 0xc32   :  { %v823_v32 = vadd.f32 %v821_v31, %v173_v55  ;;  %v1698_v55 = vld [vmem:[%s2165_s1 + $0x20] sm:$0xff] }
 0xc34   :  { %1653 = vtanh.f32 %v823_v32 }
 0xc3a   :  { %v1654_v33 = vpop.eup %1653 }
 0xc3b   :  { %v825_v34 = vsub.f32 %v1968_v29, %v1654_v33 }
 0xc3d   :  { %827 = vrot.lane.b32.xlu0 %v825_v34, %s1729_s8 }
 0xc45   :  { %92 = vperm.xlu0 %1593, %v69_v35  }
 0xc7e   :  { %v772_v36 = vpop.permute.xlu2 %771 }
 0xc7f   :  { %v774_v37 = vmul.f32 %v772_v36, %v755_v10 }
 0xc81   :  { %776 = vrot.lane.b32.xlu1 %v774_v37, %s1730_s9 }
 0xc89   :  { %95 = vperm.xlu1 %1594, %v70_v26  }
 0xcaf   :  { %v828_v1 = vpop.permute.xlu0 %827 }
 0xcb0   :  { %v830_v3 = vmul.f32 %v828_v1, %v811_v58 }
 0xcb2   :  { %832 = vrot.lane.b32.xlu2 %v830_v3, %s1730_s9 }
 0xcb7   :  { %v93_v40 = vpop.permute.xlu0 %92 }
 0xcb8   :  { %vm103_vm0 = vcmp.eq.s32.totalorder %v1801_v12, %v93_v40 }
 0xcb9   :  { %v111_v42 = vsel %vm103_vm0, 1.0, %v1728_v14 }
 0xcf3   :  { %v777_v29 = vpop.permute.xlu1 %776 }
 0xcf4   :  { %v2006_v38 = vadd.f32 %v1652_v28, %v777_v29 }
 0xcf6   :  { %v856_v39 = vpack.c.bf16 %v2006_v38, %v2006_v38 }
 0xcf8   :  { %858 = vrot.lane.b32.xlu2 %v856_v39, %s1727_s25 }
 0xcfb   :  { %v96_v41 = vpop.permute.xlu1 %95 }
 0xcfc   :  { %vm104_vm1 = vcmp.eq.s32.totalorder %v1801_v12, %v96_v41 }
 0xcfd   :  { %v112_v43 = vsel %vm104_vm1, 1.0, %v1728_v14  ;;  %v1697_v14 = vld [vmem:[%s2165_s1 + $0x28] sm:$0xff] }
 0xcfe   :  { %v116_v44 = vpack.c.bf16 %v112_v43, %v111_v42 }
 0xd00   :  { %1472 = vmatmul.msk.bf16.gmra.mxu0 %vm141_vm2, %v116_v44 }
 0xd0c   :  { %v833_v46 = vpop.permute.xlu2 %832 }
 0xd0d   :  { %v2016_v50 = vadd.f32 %v1654_v33, %v833_v46 }
 0xd0f   :  { %v836_v52 = vpack.c.bf16 %v2016_v50, %v2016_v50 }
 0xd11   :  { %838 = vrot.lane.b32.xlu0 %v836_v52, %s1727_s25 }
 0xd52   :  { %v859_v54 = vpop.permute.xlu2 %858 }
 0xd53   :  { %1518 = vmatmul.msk.bf16.vlgmr.msrb.gmra.mxu3 %vm195_vm7, %v859_v54 }
 0xd54   :  { %1266 = vmatpush.bf16.msrb.mxu3 %v1826_v47 }
 0xd58   :  { %1267 = vmatpush.bf16.msrb.mxu3 %v1839_v49 }
 0xd7d   :  { %v2038_v59 = vpop.f32.mrf.mxu0 }
 0xd83   :  { %v839_v12 = vpop.permute.xlu0 %838 }
 0xd84   :  { %1517 = vmatmul.msk.bf16.vlgmr.msra.gmra.mxu2 %vm195_vm7, %v839_v12  ;;  %1520 = vmatmul.msk.bf16.vlgmr.msrb.gmra.mxu0 %vm195_vm7, %v839_v12 }
 0xd85   :  { %1203 = vmatpush.bf16.msra.mxu2 %v1697_v14  ;;  %1286 = vmatpush.bf16.msrb.mxu0 %v1818_v45  ;;  %v2040_v51 = vpop.f32.mrf.mxu0 }
 0xd89   :  { %1204 = vmatpush.bf16.msra.mxu2 %v1698_v55  ;;  %1287 = vmatpush.bf16.msrb.mxu0 %v1832_v48 }
 0xdd6   :  { %v872_v47 = vpop.f32.mrf.mxu3 }
 0xdd7   :  { %v896_v49 = vadd.f32 %v872_v47, %v1857_v53 }
 0xdd9   :  { %898 = vrot.lane.b32.xlu2 %v896_v49, %s1727_s25 }
 0xdde   :  { %v874_v56 = vpop.f32.mrf.mxu3 }
 0xe01   :  { %v928_v45 = vpop.f32.mrf.mxu0 }
 0xe02   :  { %v952_v61 = vadd.f32 %v928_v45, %v1808_v18  ;;  %v932_v23 = vadd.f32 %v928_v45, %v2036_v57 }
 0xe04   :  { %954 = vrot.lane.b32.xlu1 %v952_v61, %s1727_s25  ;;  %v1521_v24 = vmul.f32 -1.442695, %v932_v23 }
 0xe07   :  { %v852_v62 = vpop.f32.mrf.mxu2 }
 0xe08   :  { %v853_v48 = vadd.f32 %v1872_v60, %v852_v62 }
 0xe09   :  { %v930_v0 = vpop.f32.mrf.mxu0 }
 0xe0a   :  { %v876_v2 = vadd.f32 %v872_v47, %v853_v48 }
 0xe0c   :  { %v1519_v4 = vmul.f32 -1.442695, %v876_v2 }
 0xe0e   :  { %1655 = vpow2.f32 %v1519_v4 }
 0xe0f   :  { %v854_v5 = vpop.f32.mrf.mxu2 }
 0xe14   :  { %v1656_v6 = vpop.eup %1655 }
 0xe15   :  { %v880_v7 = vadd.f32 1.0, %v1656_v6 }
 0xe17   :  { %1657 = vrcp.f32 %v880_v7  ;;  %v892_v15 = vand.u32 2147483648, %v880_v7  ;;  %vm886_vm4 = vweird.f32 %v880_v7  ;;  %v890_v16 = vand.u32 2147483647, %v880_v7 }
 0xe18   :  { %1659 = vpow2.f32 %v1521_v24 }
 0xe19   :  { %v893_v19 = vor.u32 1.1754944e-38, %v892_v15  ;;  %vm891_vm6 = vcmp.eq.f32.partialorder %v890_v16, 8.507059e+37 }
 0xe1d   :  { %v1658_v8 = vpop.eup %1657 }
 0xe1e   :  { %v882_v9 = vmul.f32 %v1658_v8, %v880_v7  ;;  %vm887_vm3 = vweird.f32 %v1658_v8  ;;  %v1660_v58 = vpop.eup %1659 }
 0xe1f   :  { %vm888_vm5 = vmor %vm886_vm4, %vm887_vm3  ;;  %v936_v25 = vadd.f32 1.0, %v1660_v58 }
 0xe20   :  { %v883_v10 = vsub.f32 1.0, %v882_v9 }
 0xe21   :  { %1661 = vrcp.f32 %v936_v25  ;;  %v948_v32 = vand.u32 2147483648, %v936_v25  ;;  %vm942_vm9 = vweird.f32 %v936_v25  ;;  %v946_v33 = vand.u32 2147483647, %v936_v25 }
 0xe22   :  { %v884_v11 = vmul.f32 %v1658_v8, %v883_v10 }
 0xe23   :  { %v949_v35 = vor.u32 1.1754944e-38, %v948_v32  ;;  %vm947_vm11 = vcmp.eq.f32.partialorder %v946_v33, 8.507059e+37 }
 0xe24   :  { %v885_v13 = vadd.f32 %v1658_v8, %v884_v11 }
 0xe26   :  { %v889_v17 = vsel %vm888_vm5, %v1658_v8, %v885_v13 }
 0xe27   :  { %v894_v21 = vsel %vm891_vm6, %v893_v19, %v889_v17  ;;  %v1662_v63 = vpop.eup %1661 }
 0xe28   :  { %v938_v27 = vmul.f32 %v1662_v63, %v936_v25  ;;  %vm943_vm8 = vweird.f32 %v1662_v63 }
 0xe29   :  { %vm944_vm10 = vmor %vm942_vm9, %vm943_vm8 }
 0xe2a   :  { %v939_v28 = vsub.f32 1.0, %v938_v27 }
 0xe2c   :  { %v940_v30 = vmul.f32 %v1662_v63, %v939_v28 }
 0xe2e   :  { %v941_v31 = vadd.f32 %v1662_v63, %v940_v30 }
 0xe30   :  { %v945_v34 = vsel %vm944_vm10, %v1662_v63, %v941_v31 }
 0xe31   :  { %v950_v37 = vsel %vm947_vm11, %v949_v35, %v945_v34 }
 0xe33   :  { %v899_v20 = vpop.permute.xlu2 %898 }
 0xe34   :  { %v901_v22 = vmul.f32 %v899_v20, %v894_v21 }
 0xe36   :  { %903 = vrot.lane.b32.xlu1 %v901_v22, %s1727_s25 }
 0xe76   :  { %v955_v36 = vpop.permute.xlu1 %954 }
 0xe77   :  { %v957_v26 = vmul.f32 %v955_v36, %v950_v37 }
 0xe79   :  { %959 = vrot.lane.b32.xlu0 %v957_v26, %s1727_s25 }
 0xea8   :  { %v904_v1 = vpop.permute.xlu1 %903 }
 0xea9   :  { %v906_v3 = vadd.f32 %v904_v1, %v853_v48 }
 0xeab   :  { %1663 = vtanh.f32 %v906_v3 }
 0xeb1   :  { %v1664_v29 = vpop.eup %1663 }
 0xeb2   :  { %v908_v39 = vsub.f32 %v2006_v38, %v1664_v29 }
 0xeb4   :  { %910 = vrot.lane.b32.xlu0 %v908_v39, %s1729_s8 }
 0xeeb   :  { %v960_v40 = vpop.permute.xlu0 %959 }
 0xeec   :  { %v962_v41 = vadd.f32 %v960_v40, %v2036_v57 }
 0xeee   :  { %1665 = vtanh.f32 %v962_v41 }
 0xef4   :  { %v1666_v42 = vpop.eup %1665 }
 0xef5   :  { %v964_v43 = vsub.f32 %v2016_v50, %v1666_v42 }
 0xef7   :  { %966 = vrot.lane.b32.xlu2 %v964_v43, %s1729_s8 }
 0xf26   :  { %v911_v44 = vpop.permute.xlu0 %910 }
 0xf27   :  { %v913_v46 = vmul.f32 %v911_v44, %v894_v21 }
 0xf29   :  { %915 = vrot.lane.b32.xlu2 %v913_v46, %s1730_s9 }
 0xf51   :  { %v967_v52 = vpop.permute.xlu2 %966 }
 0xf52   :  { %v969_v54 = vmul.f32 %v967_v52, %v950_v37 }
 0xf54   :  { %971 = vrot.lane.b32.xlu1 %v969_v54, %s1730_s9 }
 0xf83   :  { %v916_v38 = vpop.permute.xlu2 %915 }
 0xf84   :  { %v2055_v12 = vadd.f32 %v1664_v29, %v916_v38 }
 0xf86   :  { %v995_v14 = vpack.c.bf16 %v2055_v12, %v2055_v12 }
 0xf88   :  { %997 = vrot.lane.b32.xlu1 %v995_v14, %s1727_s25 }
 0xfc6   :  { %v972_v55 = vpop.permute.xlu1 %971 }
 0xfc7   :  { %v2060_v50 = vadd.f32 %v1666_v42, %v972_v55 }
 0xfc9   :  { %v975_v47 = vpack.c.bf16 %v2060_v50, %v2060_v50 }
 0xfcb   :  { %977 = vrot.lane.b32.xlu0 %v975_v47, %s1727_s25 }
 0xffa   :  { %v998_v49 = vpop.permute.xlu1 %997 }
 0xffb   :  { %1523 = vmatmul.msk.bf16.vlgmr.msrb.gmra.mxu2 %vm195_vm7, %v998_v49 }
0x103d   :  { %v978_v56 = vpop.permute.xlu0 %977 }
0x103e   :  { %1522 = vmatmul.msk.bf16.vlgmr.msra.gmra.mxu1 %vm195_vm7, %v978_v56  ;;  %1525 = vmatmul.msk.bf16.vlgmr.msra.gmra.mxu3 %vm195_vm7, %v978_v56 }
0x107e   :  { %v1011_v57 = vpop.f32.mrf.mxu2 }
0x107f   :  { %v1035_v45 = vadd.f32 %v1011_v57, %v1857_v53 }
0x1081   :  { %1037 = vrot.lane.b32.xlu0 %v1035_v45, %s1727_s25 }
0x1086   :  { %v1013_v61 = vpop.f32.mrf.mxu2 }
0x10bb   :  { %v991_v62 = vpop.f32.mrf.mxu1 }
0x10bc   :  { %v992_v48 = vadd.f32 %v1872_v60, %v991_v62 }
0x10be   :  { %v1015_v2 = vadd.f32 %v1011_v57, %v992_v48 }
0x10c0   :  { %v1524_v6 = vmul.f32 -1.442695, %v1015_v2 }
0x10c1   :  { %v1067_v0 = vpop.f32.mrf.mxu3 }
0x10c2   :  { %v1091_v4 = vadd.f32 %v1067_v0, %v1808_v18  ;;  %1667 = vpow2.f32 %v1524_v6  ;;  %v1071_v60 = vadd.f32 %v1067_v0, %v2038_v59 }
0x10c3   :  { %v993_v5 = vpop.f32.mrf.mxu1 }
0x10c4   :  { %1093 = vrot.lane.b32.xlu2 %v1091_v4, %s1727_s25  ;;  %v1526_v21 = vmul.f32 -1.442695, %v1071_v60 }
0x10c8   :  { %v1668_v8 = vpop.eup %1667 }
0x10c9   :  { %v1069_v7 = vpop.f32.mrf.mxu3  ;;  %v1019_v9 = vadd.f32 1.0, %v1668_v8 }
0x10cb   :  { %1669 = vrcp.f32 %v1019_v9  ;;  %v1031_v17 = vand.u32 2147483648, %v1019_v9  ;;  %vm1025_vm13 = vweird.f32 %v1019_v9  ;;  %v1029_v19 = vand.u32 2147483647, %v1019_v9 }
0x10cc   :  { %1671 = vpow2.f32 %v1526_v21 }
0x10cd   :  { %v1032_v22 = vor.u32 1.1754944e-38, %v1031_v17  ;;  %vm1030_vm15 = vcmp.eq.f32.partialorder %v1029_v19, 8.507059e+37 }
0x10d1   :  { %v1670_v10 = vpop.eup %1669 }
0x10d2   :  { %v1021_v11 = vmul.f32 %v1670_v10, %v1019_v9  ;;  %vm1026_vm12 = vweird.f32 %v1670_v10  ;;  %v1672_v25 = vpop.eup %1671 }
0x10d3   :  { %vm1027_vm14 = vmor %vm1025_vm13, %vm1026_vm12  ;;  %v1075_v63 = vadd.f32 1.0, %v1672_v25 }
0x10d4   :  { %v1022_v13 = vsub.f32 1.0, %v1021_v11 }
0x10d5   :  { %1673 = vrcp.f32 %v1075_v63  ;;  %v1087_v33 = vand.u32 2147483648, %v1075_v63  ;;  %vm1081_vm1 = vweird.f32 %v1075_v63  ;;  %v1085_v34 = vand.u32 2147483647, %v1075_v63 }
0x10d6   :  { %v1023_v15 = vmul.f32 %v1670_v10, %v1022_v13 }
0x10d7   :  { %v1088_v36 = vor.u32 1.1754944e-38, %v1087_v33  ;;  %vm1086_vm4 = vcmp.eq.f32.partialorder %v1085_v34, 8.507059e+37 }
0x10d8   :  { %v1024_v16 = vadd.f32 %v1670_v10, %v1023_v15 }
0x10da   :  { %v1028_v20 = vsel %vm1027_vm14, %v1670_v10, %v1024_v16 }
0x10db   :  { %v1033_v24 = vsel %vm1030_vm15, %v1032_v22, %v1028_v20  ;;  %v1674_v27 = vpop.eup %1673 }
0x10dc   :  { %v1077_v28 = vmul.f32 %v1674_v27, %v1075_v63  ;;  %vm1082_vm0 = vweird.f32 %v1674_v27 }
0x10dd   :  { %vm1083_vm3 = vmor %vm1081_vm1, %vm1082_vm0 }
0x10de   :  { %v1078_v30 = vsub.f32 1.0, %v1077_v28 }
0x10e0   :  { %v1079_v31 = vmul.f32 %v1674_v27, %v1078_v30 }
0x10e2   :  { %v1080_v32 = vadd.f32 %v1674_v27, %v1079_v31 }
0x10e4   :  { %v1084_v35 = vsel %vm1083_vm3, %v1674_v27, %v1080_v32  ;;  %vm1386_vm3 = vcmask 785408  }
0x10e5   :  { %v1089_v26 = vsel %vm1086_vm4, %v1088_v36, %v1084_v35 }
0x10f3   :  { %v1038_v23 = vpop.permute.xlu0 %1037 }
0x10f4   :  { %v1040_v58 = vmul.f32 %v1038_v23, %v1033_v24 }
0x10f6   :  { %1042 = vrot.lane.b32.xlu2 %v1040_v58, %s1727_s25 }
0x111e   :  { %v1094_v37 = vpop.permute.xlu2 %1093 }
0x111f   :  { %v1096_v1 = vmul.f32 %v1094_v37, %v1089_v26 }
0x1121   :  { %1098 = vrot.lane.b32.xlu1 %v1096_v1, %s1727_s25 }
0x1150   :  { %v1043_v3 = vpop.permute.xlu2 %1042 }
0x1151   :  { %v1045_v29 = vadd.f32 %v1043_v3, %v992_v48  ;;  %v2101_v48 = vld [vmem:[%s2167_s3] ss:$0 sm:$0xff] }
0x1153   :  { %1675 = vtanh.f32 %v1045_v29 }
0x1159   :  { %v1676_v39 = vpop.eup %1675 }
0x115a   :  { %v1047_v40 = vsub.f32 %v2055_v12, %v1676_v39 }
0x115c   :  { %1049 = vrot.lane.b32.xlu1 %v1047_v40, %s1729_s8 }
0x1193   :  { %v1099_v41 = vpop.permute.xlu1 %1098 }
0x1194   :  { %v1101_v42 = vadd.f32 %v1099_v41, %v2038_v59 }
0x1196   :  { %1677 = vtanh.f32 %v1101_v42 }
0x119c   :  { %v1678_v43 = vpop.eup %1677 }
0x119d   :  { %v1103_v44 = vsub.f32 %v2060_v50, %v1678_v43 }
0x119f   :  { %1105 = vrot.lane.b32.xlu0 %v1103_v44, %s1729_s8 }
0x11ce   :  { %v1050_v46 = vpop.permute.xlu1 %1049 }
0x11cf   :  { %v1052_v52 = vmul.f32 %v1050_v46, %v1033_v24 }
0x11d1   :  { %1054 = vrot.lane.b32.xlu0 %v1052_v52, %s1730_s9 }
0x1211   :  { %v1106_v54 = vpop.permute.xlu0 %1105 }
0x1212   :  { %v1108_v38 = vmul.f32 %v1106_v54, %v1089_v26 }
0x1214   :  { %1110 = vrot.lane.b32.xlu2 %v1108_v38, %s1730_s9 }
0x1243   :  { %v1055_v12 = vpop.permute.xlu0 %1054 }
0x1244   :  { %v2083_v14 = vadd.f32 %v1676_v39, %v1055_v12 }
0x1246   :  { %v1134_v59 = vpack.c.bf16 %v2083_v14, %v2083_v14 }
0x1248   :  { %1136 = vrot.lane.b32.xlu2 %v1134_v59, %s1727_s25 }
0x126e   :  { %v1111_v55 = vpop.permute.xlu2 %1110 }
0x126f   :  { %v2088_v50 = vadd.f32 %v1678_v43, %v1111_v55 }
0x1271   :  { %v1114_v47 = vpack.c.bf16 %v2088_v50, %v2088_v50 }
0x1273   :  { %1116 = vrot.lane.b32.xlu1 %v1114_v47, %s1727_s25 }
0x12a2   :  { %v1137_v49 = vpop.permute.xlu2 %1136 }
0x12a3   :  { %1528 = vmatmul.msk.bf16.vlgmr.msrb.gmra.mxu1 %vm195_vm7, %v1137_v49 }
0x12e5   :  { %v1117_v56 = vpop.permute.xlu1 %1116 }
0x12e6   :  { %1527 = vmatmul.msk.bf16.vlgmr.msra.gmra.mxu0 %vm195_vm7, %v1117_v56  ;;  %1530 = vmatmul.msk.bf16.vlgmr.msra.gmra.mxu2 %vm195_vm7, %v1117_v56 }
0x1320   :  { %v1150_v57 = vpop.f32.mrf.mxu1 }
0x1321   :  { %v1174_v45 = vadd.f32 %v1150_v57, %v1857_v53 }
0x1323   :  { %1176 = vrot.lane.b32.xlu0 %v1174_v45, %s1727_s25 }
0x1328   :  { %v1152_v61 = vpop.f32.mrf.mxu1 }
0x1363   :  { %v1130_v62 = vpop.f32.mrf.mxu0 }
0x1364   :  { %v1131_v0 = vadd.f32 %v2101_v48, %v1130_v62 }
0x1366   :  { %v1154_v2 = vadd.f32 %v1150_v57, %v1131_v0 }
0x1368   :  { %v1529_v4 = vmul.f32 -1.442695, %v1154_v2 }
0x1369   :  { %v1206_v5 = vpop.f32.mrf.mxu2 }
0x136a   :  { %v1230_v6 = vadd.f32 %v1206_v5, %v1808_v18  ;;  %1679 = vpow2.f32 %v1529_v4  ;;  %v1210_v24 = vadd.f32 %v1206_v5, %v2040_v51 }
0x136b   :  { %v1132_v7 = vpop.f32.mrf.mxu0 }
0x136c   :  { %1232 = vrot.lane.b32.xlu1 %v1230_v6, %s1727_s25  ;;  %v1531_v58 = vmul.f32 -1.442695, %v1210_v24 }
0x1370   :  { %v1680_v9 = vpop.eup %1679 }
0x1371   :  { %v1208_v8 = vpop.f32.mrf.mxu2  ;;  %v1158_v10 = vadd.f32 1.0, %v1680_v9 }
0x1373   :  { %1681 = vrcp.f32 %v1158_v10  ;;  %v1170_v17 = vand.u32 2147483648, %v1158_v10  ;;  %vm1164_vm6 = vweird.f32 %v1158_v10  ;;  %v1168_v19 = vand.u32 2147483647, %v1158_v10 }
0x1374   :  { %1683 = vpow2.f32 %v1531_v58 }
0x1375   :  { %v1171_v18 = vor.u32 1.1754944e-38, %v1170_v17  ;;  %vm1169_vm9 = vcmp.eq.f32.partialorder %v1168_v19, 8.507059e+37 }
0x1379   :  { %v1682_v11 = vpop.eup %1681 }
0x137a   :  { %v1160_v13 = vmul.f32 %v1682_v11, %v1158_v10  ;;  %vm1165_vm5 = vweird.f32 %v1682_v11  ;;  %v1684_v25 = vpop.eup %1683 }
0x137b   :  { %vm1166_vm8 = vmor %vm1164_vm6, %vm1165_vm5  ;;  %v1214_v63 = vadd.f32 1.0, %v1684_v25 }
0x137c   :  { %v1161_v15 = vsub.f32 1.0, %v1160_v13 }
0x137d   :  { %1685 = vrcp.f32 %v1214_v63  ;;  %v1226_v33 = vand.u32 2147483648, %v1214_v63  ;;  %vm1220_vm11 = vweird.f32 %v1214_v63  ;;  %v1224_v34 = vand.u32 2147483647, %v1214_v63 }
0x137e   :  { %v1162_v16 = vmul.f32 %v1682_v11, %v1161_v15 }
0x137f   :  { %v1227_v36 = vor.u32 1.1754944e-38, %v1226_v33  ;;  %vm1225_vm13 = vcmp.eq.f32.partialorder %v1224_v34, 8.507059e+37  ;;  %v1586_v33 = vld [vmem:[%s2166_s2 + $0x38] sm:$0xff]  ;;  %v1585_v34 = vld [vmem:[%s2166_s2 + $0x30] sm:$0xff] }
0x1380   :  { %v1163_v60 = vadd.f32 %v1682_v11, %v1162_v16  ;;  %1426 = vmatpush.bf16.msrb.mxu2 %v1586_v33 }
0x1382   :  { %v1167_v20 = vsel %vm1166_vm8, %v1682_v11, %v1163_v60 }
0x1383   :  { %v1172_v22 = vsel %vm1169_vm9, %v1171_v18, %v1167_v20  ;;  %v1686_v27 = vpop.eup %1685 }
0x1384   :  { %v1216_v28 = vmul.f32 %v1686_v27, %v1214_v63  ;;  %vm1221_vm10 = vweird.f32 %v1686_v27  ;;  %v1584_v63 = vld [vmem:[%s2166_s2 + $0x28] sm:$0xff]  ;;  %1427 = vmatpush.bf16.msrb.mxu2 %v1585_v34 }
0x1385   :  { %vm1222_vm12 = vmor %vm1220_vm11, %vm1221_vm10  ;;  %1392 = vmatpush.bf16.msra.mxu1 %v1584_v63 }
0x1386   :  { %v1217_v30 = vsub.f32 1.0, %v1216_v28  ;;  %v1582_v28 = vld [vmem:[%s2166_s2 + $0x18] sm:$0xff] }
0x1388   :  { %v1218_v31 = vmul.f32 %v1686_v27, %v1217_v30  ;;  %v1581_v30 = vld [vmem:[%s2166_s2 + $0x10] sm:$0xff] }
0x138a   :  { %v1219_v32 = vadd.f32 %v1686_v27, %v1218_v31  ;;  %v1580_v31 = vld [vmem:[%s2166_s2 + $0x8] sm:$0xff] }
0x138c   :  { %v1223_v35 = vsel %vm1222_vm12, %v1686_v27, %v1219_v32  ;;  %v1583_v27 = vld [vmem:[%s2166_s2 + $0x20] sm:$0xff] }
0x138d   :  { %v1228_v26 = vsel %vm1225_vm13, %v1227_v36, %v1223_v35  ;;  %1393 = vmatpush.bf16.msra.mxu1 %v1583_v27  ;;  %v1579_v32 = vld [vmem:[%s2166_s2] sm:$0xff] }
0x1391   :  { %1394 = vmatpush.bf16.msra.mxu1 %v1582_v28 }
0x1395   :  { %v1177_v21 = vpop.permute.xlu0 %1176  ;;  %1395 = vmatpush.bf16.msra.mxu1 %v1581_v30 }
0x1396   :  { %v1179_v23 = vmul.f32 %v1177_v21, %v1172_v22 }
0x1398   :  { %1181 = vrot.lane.b32.xlu2 %v1179_v23, %s1727_s25 }
0x1399   :  { %1396 = vmatpush.bf16.msra.mxu1 %v1580_v31 }
0x139d   :  { %1397 = vmatpush.bf16.msra.mxu1 %v1579_v32 }
0x13de   :  { %v1233_v37 = vpop.permute.xlu1 %1232 }
0x13df   :  { %v1235_v1 = vmul.f32 %v1233_v37, %v1228_v26 }
0x13e1   :  { %1237 = vrot.lane.b32.xlu0 %v1235_v1, %s1727_s25 }
0x13f2   :  { %v1182_v3 = vpop.permute.xlu2 %1181 }
0x13f3   :  { %v1184_v29 = vadd.f32 %v1182_v3, %v1131_v0 }
0x13f5   :  { %1687 = vtanh.f32 %v1184_v29  ;;  %v1599_v29 = vld [vmem:[%s2167_s3 + $0x3] ss:$0 sm:$0xff] }
0x13fb   :  { %v1688_v39 = vpop.eup %1687 }
0x13fc   :  { %v1186_v40 = vsub.f32 %v2083_v14, %v1688_v39 }
0x13fe   :  { %1188 = vrot.lane.b32.xlu1 %v1186_v40, %s1729_s8 }
0x1453   :  { %v1238_v41 = vpop.permute.xlu0 %1237 }
0x1454   :  { %v1240_v42 = vadd.f32 %v1238_v41, %v2040_v51 }
0x1456   :  { %1689 = vtanh.f32 %v1240_v42 }
0x145c   :  { %v1690_v43 = vpop.eup %1689 }
0x145d   :  { %v1242_v44 = vsub.f32 %v2088_v50, %v1690_v43 }
0x145f   :  { %1244 = vrot.lane.b32.xlu2 %v1242_v44, %s1729_s8  ;;  %v1600_v44 = vld [vmem:[%s2167_s3 + $0x4] ss:$0 sm:$0xff] }
0x1470   :  { %v1189_v46 = vpop.permute.xlu1 %1188 }
0x1471   :  { %v1191_v52 = vmul.f32 %v1189_v46, %v1172_v22 }
0x1473   :  { %1193 = vrot.lane.b32.xlu0 %v1191_v52, %s1730_s9 }
0x14b9   :  { %v1245_v54 = vpop.permute.xlu2 %1244 }
0x14ba   :  { %v1247_v38 = vmul.f32 %v1245_v54, %v1228_v26 }
0x14bc   :  { %1249 = vrot.lane.b32.xlu1 %v1247_v38, %s1730_s9 }
0x14e5   :  { %v1194_v12 = vpop.permute.xlu0 %1193 }
0x14e6   :  { %v1196_v14 = vadd.f32 %v1688_v39, %v1194_v12 }
0x14e8   :  { %v1273_v59 = vpack.c.bf16 %v1196_v14, %v1196_v14 }
0x14ea   :  { %1275 = vrot.lane.b32.xlu2 %v1273_v59, %s1727_s25 }
0x152e   :  { %v1250_v51 = vpop.permute.xlu1 %1249 }
0x152f   :  { %v1252_v55 = vadd.f32 %v1690_v43, %v1250_v51 }
0x1531   :  { %v1253_v47 = vpack.c.bf16 %v1252_v55, %v1252_v55 }
0x1533   :  { %1255 = vrot.lane.b32.xlu0 %v1253_v47, %s1727_s25 }
0x1544   :  { %v1276_v50 = vpop.permute.xlu2 %1275 }
0x1545   :  { %1533 = vmatmul.msk.bf16.vlgmr.msrb.gmra.mxu0 %vm195_vm7, %v1276_v50 }
0x15a5   :  { %v1256_v49 = vpop.permute.xlu0 %1255 }
0x15a6   :  { %1532 = vmatmul.msk.bf16.vlgmr.msrb.gmra.mxu3 %vm195_vm7, %v1256_v49 }
0x15c2   :  { %v1289_v56 = vpop.f32.mrf.mxu0 }
0x15c3   :  { %v1313_v57 = vadd.f32 %v1289_v56, %v1857_v53 }
0x15c5   :  { %1315 = vrot.lane.b32.xlu1 %v1313_v57, %s1727_s25 }
0x15ca   :  { %v1291_v45 = vpop.f32.mrf.mxu0 }
0x1629   :  { %v1269_v61 = vpop.f32.mrf.mxu3 }
0x162a   :  { %v1270_v62 = vadd.f32 %v2101_v48, %v1269_v61 }
0x162c   :  { %v1293_v0 = vadd.f32 %v1289_v56, %v1270_v62 }
0x162e   :  { %v1534_v2 = vmul.f32 -1.442695, %v1293_v0 }
0x1630   :  { %1691 = vpow2.f32 %v1534_v2 }
0x1631   :  { %v1271_v4 = vpop.f32.mrf.mxu3 }
0x1636   :  { %v1692_v5 = vpop.eup %1691 }
0x1637   :  { %v1297_v6 = vadd.f32 1.0, %v1692_v5  ;;  %v1316_v48 = vpop.permute.xlu1 %1315 }
0x1639   :  { %1693 = vrcp.f32 %v1297_v6  ;;  %v1309_v10 = vand.u32 2147483648, %v1297_v6  ;;  %v1307_v53 = vand.u32 2147483647, %v1297_v6  ;;  %vm1303_vm15 = vweird.f32 %v1297_v6 }
0x163b   :  { %v1310_v15 = vor.u32 1.1754944e-38, %v1309_v10  ;;  %vm1308_vm1 = vcmp.eq.f32.partialorder %v1307_v53, 8.507059e+37 }
0x163f   :  { %v1694_v7 = vpop.eup %1693 }
0x1640   :  { %v1299_v8 = vmul.f32 %v1694_v7, %v1297_v6  ;;  %vm1304_vm14 = vweird.f32 %v1694_v7 }
0x1641   :  { %vm1305_vm0 = vmor %vm1303_vm15, %vm1304_vm14 }
0x1642   :  { %v1300_v9 = vsub.f32 1.0, %v1299_v8 }
0x1644   :  { %v1301_v11 = vmul.f32 %v1694_v7, %v1300_v9 }
0x1646   :  { %v1302_v13 = vadd.f32 %v1694_v7, %v1301_v11 }
0x1648   :  { %v1306_v16 = vsel %vm1305_vm0, %v1694_v7, %v1302_v13 }
0x1649   :  { %v1311_v60 = vsel %vm1308_vm1, %v1310_v15, %v1306_v16 }
0x164a   :  { %v1318_v17 = vmul.f32 %v1316_v48, %v1311_v60 }
0x164c   :  { %1320 = vrot.lane.b32.xlu2 %v1318_v17, %s1727_s25 }
0x16a6   :  { %v1321_v19 = vpop.permute.xlu2 %1320 }
0x16a7   :  { %v1323_v20 = vadd.f32 %v1321_v19, %v1270_v62 }
0x16a9   :  { %1695 = vtanh.f32 %v1323_v20 }
0x16af   :  { %v1696_v18 = vpop.eup %1695 }
0x16b0   :  { %v1325_v21 = vsub.f32 %v1196_v14, %v1696_v18 }
0x16b2   :  { %1327 = vrot.lane.b32.xlu0 %v1325_v21, %s1729_s8 }
0x1724   :  { %v1328_v22 = vpop.permute.xlu0 %1327 }
0x1725   :  { %v1330_v23 = vmul.f32 %v1328_v22, %v1311_v60 }
0x1727   :  { %1332 = vrot.lane.b32.xlu1 %v1330_v23, %s1730_s9 }
0x1799   :  { %v1333_v24 = vpop.permute.xlu1 %1332 }
0x179a   :  { %v1335_v58 = vadd.f32 %v1696_v18, %v1333_v24 }
0x179c   :  { %1337 = vrot.lane.b32.xlu2 %v1335_v58, %s1727_s25  ;;  %v1340_v25 = vrot.slane %v1335_v58, 2  ;;  %v1344_v35 = vrot.slane %v1335_v58, 4 }
0x179e   :  { %1341 = vrot.lane.b32.xlu0 %v1340_v25, %s1729_s8 }
0x17f6   :  { %v1338_v36 = vpop.permute.xlu2 %1337 }
0x1810   :  { %v1342_v37 = vpop.permute.xlu0 %1341 }
0x1811   :  { %v1346_v26 = vsel %vm195_vm7, %v1338_v36, %v1342_v37 }
0x1812   :  { %v1347_v1 = vsel %vm141_vm2, %v1346_v26, %v1344_v35  ;;  %vm1435_vm2 = vcmask 25600  }
0x1813   :  { %v1348_v3 = vpack.c.bf16 %v1347_v1, %v1347_v1 }
0x1815   :  { %1559 = vmatmul.msk.bf16.vlgmr.msra.gmra.mxu1 %vm1386_vm3, %v1348_v3 }
0x1892   :  { %v1399_v39 = vpop.f32.mrf.mxu1 }
0x1893   :  { %v1400_v40 = vadd.f32 %v1599_v29, %v1399_v39 }
0x1895   :  { %v1403_v41 = vmax.f32 %v1400_v40, 0.0 }
0x1897   :  { %v1404_v42 = vpack.c.bf16 %v1403_v41, %v1403_v41 }
0x1899   :  { %1568 = vmatmul.msk.bf16.vlgmr.msrb.gmra.mxu2 %vm195_vm7, %v1404_v42 }
0x189a   :  { %v1401_v43 = vpop.f32.mrf.mxu1 }
0x191c   :  { %v1429_v46 = vpop.f32.mrf.mxu2 }
0x191d   :  { %v1434_v52 = vadd.f32 %v1600_v44, %v1429_v46 }
0x191f   :  { %1436 = vst.msk [vmem:[#allocation2] sm:$0x3] %vm1435_vm2, %v1434_v52 }
0x1920   :  { %1447 = dma.vmem_to_hbm [thread:$0]  %s1443_s7, 32, %s1445_s11, [#allocation3]  }
0x1924   :  { %v1431_v54 = vpop.f32.mrf.mxu2 }
0x1925   :  { %1724 = dma.done.wait [#allocation3], 32  }
0x1926   :  { %1725 = vsyncadd [#allocation3], 4294967264 }
0x1927   :  { %1452 = vsyncpa [#allocation3], 1 }

</bundles_post_ra>
